<compile_context>
chip_gen: v5e
topology: v5e:2x2
jax: 0.10.0
libtpu: 0.0.40
codegen_flags: <defaults>
</compile_context>

<pallas_src>
import jax
import jax.numpy as jnp
from jax.experimental import pallas as pl
from jax.experimental.pallas import tpu as pltpu

IN_DIM = 28 * 28      # 784
IN_PAD = 896          # 7 * 128: lane-aligned K for fc1
H1 = 512
H2 = 256
OUT = 10
OUT_PAD = 128         # lane-dense logits / output tile
NEG_BIG = -1e30       # softmax mask baked into padded bias lanes


def _round_up(n, m):
    return ((n + m - 1) // m) * m


def mlp_kernel(x_ref, w1_ref, b1_ref, w2_ref, b2_ref, w3_ref, b3_ref, o_ref):
    x = x_ref[...]                                               # (TB, IN_PAD) bf16

    # fc1 + ReLU  (bf16 x bf16 -> f32 accumulate on the MXU)
    h1 = jnp.dot(x, w1_ref[...], preferred_element_type=jnp.float32)
    h1 = jnp.maximum(h1 + b1_ref[...], 0.0)                      # (TB, 512) f32

    # fc2 + ReLU
    h2 = jnp.dot(h1.astype(jnp.bfloat16), w2_ref[...],
                 preferred_element_type=jnp.float32)
    h2 = jnp.maximum(h2 + b2_ref[...], 0.0)                      # (TB, 256) f32

    # fc3: logits in a lane-dense 128-wide tile.
    # Padded lanes of b3 carry -1e30, so they vanish in the softmax.
    logits = jnp.dot(h2.astype(jnp.bfloat16), w3_ref[...],
                     preferred_element_type=jnp.float32)
    logits = logits + b3_ref[...]                                # (TB, 128) f32

    # numerically stable row softmax (dim=1)
    m = jnp.max(logits, axis=1, keepdims=True)
    e = jnp.exp(logits - m)
    denom = jnp.sum(e, axis=1, keepdims=True)
    o_ref[...] = e / denom


def mynet_forward(x, params):
    """x: (B, 1, 28, 28) or (B, 784) float32. Returns (B, 10) softmax probs."""
    w1, b1, w2, b2, w3, b3 = params                  # f32, (in,out) weights / (1,out) biases
    x2d = x.reshape(-1, IN_DIM).astype(jnp.float32)
    B = x2d.shape[0]

    # --- padding & casting on the XLA side (layout plumbing, not compute) ---
    w1p = jnp.zeros((IN_PAD, H1), jnp.float32).at[:IN_DIM].set(w1).astype(jnp.bfloat16)
    w2p = w2.astype(jnp.bfloat16)
    w3p = jnp.zeros((H2, OUT_PAD), jnp.float32).at[:, :OUT].set(w3).astype(jnp.bfloat16)
    b3p = jnp.full((1, OUT_PAD), NEG_BIG, jnp.float32).at[:, :OUT].set(b3)

    # batch tile: full 256-row MXU M dim when the batch allows, else pad to 16
    # (bf16 min sublane tile is 16)
    TB = min(256, _round_up(B, 16))
    B_pad = _round_up(B, TB)
    xp = jnp.zeros((B_pad, IN_PAD), jnp.float32).at[:B, :IN_DIM].set(x2d)
    xp = xp.astype(jnp.bfloat16)

    grid = (B_pad // TB,)
    tiled = lambda shape: pl.BlockSpec(shape, lambda i: (i, 0))      # pipelined over batch
    resident = lambda shape: pl.BlockSpec(shape, lambda i: (0, 0))   # stays VMEM-resident

    out_pad = pl.pallas_call(
        mlp_kernel,
        out_shape=jax.ShapeDtypeStruct((B_pad, OUT_PAD), jnp.float32),
        grid=grid,
        in_specs=[
            tiled((TB, IN_PAD)),
            resident((IN_PAD, H1)), resident((1, H1)),
            resident((H1, H2)),     resident((1, H2)),
            resident((H2, OUT_PAD)), resident((1, OUT_PAD)),
        ],
        out_specs=tiled((TB, OUT_PAD)),
        compiler_params=pltpu.CompilerParams(
            dimension_semantics=("parallel",),
            vmem_limit_bytes=16 << 20,
        ),
    )(xp, w1p, b1, w2p, b2, w3p, b3p)

    return out_pad[:B, :OUT]


def init_params(key):
    """Deterministic parameter init (same shapes as the PyTorch module).

    Weights stored as (in, out) = torch weight transposed; biases as (1, out).
    """
    ks = jax.random.split(key, 6)

    def linear(kw, kb, fan_in, fan_out):
        bound = 1.0 / jnp.sqrt(fan_in)
        w = jax.random.uniform(kw, (fan_in, fan_out), jnp.float32, -bound, bound)
        b = jax.random.uniform(kb, (1, fan_out), jnp.float32, -bound, bound)
        return w, b

    w1, b1 = linear(ks[0], ks[1], IN_DIM, H1)
    w2, b2 = linear(ks[2], ks[3], H1, H2)
    w3, b3 = linear(ks[4], ks[5], H2, OUT)
    return (w1, b1, w2, b2, w3, b3)


def _reference(x, params):
    """Pure-JAX f32 reference matching the PyTorch forward."""
    w1, b1, w2, b2, w3, b3 = params
    x2d = x.reshape(-1, IN_DIM)
    h1 = jnp.maximum(x2d @ w1 + b1, 0.0)
    h2 = jnp.maximum(h1 @ w2 + b2, 0.0)
    return jax.nn.softmax(h2 @ w3 + b3, axis=1)


if __name__ == "__main__":
    key = jax.random.PRNGKey(0)
    kx, kp = jax.random.split(key)

    # MNIST-shaped synthetic input, NCHW like PyTorch: (batch, 1, 28, 28)
    batch = 8
    x = jax.random.normal(kx, (batch, 1, 28, 28), jnp.float32)

    params = init_params(kp)

    out = mynet_forward(x, params)
    out = jax.block_until_ready(out)

    ref = _reference(x, params)
    assert out.shape == (batch, OUT)
    # bf16 weights/activations -> loosened tolerance vs. the f32 reference
    assert jnp.allclose(out, ref, atol=3e-2, rtol=0.0), float(jnp.max(jnp.abs(out - ref)))
    assert jnp.allclose(jnp.sum(out, axis=1), 1.0, atol=1e-4)
    assert jnp.all(jnp.argmax(out, axis=1) == jnp.argmax(ref, axis=1))

    print("KERNEL_OK")
</pallas_src>

<mosaic_0001>
module attributes {stable_mosaic.version = 11 : i64} {
  func.func @mlp_kernel(%arg0: i32, %arg1: memref<16x896xbf16, #tpu.memory_space<vmem>>, %arg2: memref<896x512xbf16, #tpu.memory_space<vmem>>, %arg3: memref<1x512xf32, #tpu.memory_space<vmem>>, %arg4: memref<512x256xbf16, #tpu.memory_space<vmem>>, %arg5: memref<1x256xf32, #tpu.memory_space<vmem>>, %arg6: memref<256x128xbf16, #tpu.memory_space<vmem>>, %arg7: memref<1x128xf32, #tpu.memory_space<vmem>>, %arg8: memref<16x128xf32, #tpu.memory_space<vmem>>) attributes {dimension_semantics = [#tpu.dimension_semantics<parallel>], iteration_bounds = array<i64: 1>, scalar_prefetch = 0 : i64, scratch_operands = 0 : i64, tpu.core_type = #tpu.core_type<tc>, window_params = [{transform_indices = @transform_0, window_bounds = array<i64: 16, 896>}, {pipeline_mode = #tpu.pipeline_mode<synchronous>, transform_indices = @transform_1, window_bounds = array<i64: 896, 512>}, {pipeline_mode = #tpu.pipeline_mode<synchronous>, transform_indices = @transform_2, window_bounds = array<i64: 1, 512>}, {pipeline_mode = #tpu.pipeline_mode<synchronous>, transform_indices = @transform_3, window_bounds = array<i64: 512, 256>}, {pipeline_mode = #tpu.pipeline_mode<synchronous>, transform_indices = @transform_4, window_bounds = array<i64: 1, 256>}, {pipeline_mode = #tpu.pipeline_mode<synchronous>, transform_indices = @transform_5, window_bounds = array<i64: 256, 128>}, {pipeline_mode = #tpu.pipeline_mode<synchronous>, transform_indices = @transform_6, window_bounds = array<i64: 1, 128>}, {transform_indices = @transform_7, window_bounds = array<i64: 16, 128>}]} {
    %c0 = arith.constant 0 : index
    %c0_0 = arith.constant 0 : index
    %0 = vector.load %arg1[%c0, %c0_0] : memref<16x896xbf16, #tpu.memory_space<vmem>>, vector<16x896xbf16>
    %c0_1 = arith.constant 0 : index
    %c0_2 = arith.constant 0 : index
    %1 = vector.load %arg2[%c0_1, %c0_2] : memref<896x512xbf16, #tpu.memory_space<vmem>>, vector<896x512xbf16>
    %cst = arith.constant dense<0.000000e+00> : vector<16x512xf32>
    %2 = tpu.matmul %0, %1, %cst {dimension_numbers = #tpu.dot_dimension_numbers<[1], [0], [0], [1], [0, 0, 1, 1], [], []>} : vector<16x896xbf16>, vector<896x512xbf16>, vector<16x512xf32> -> vector<16x512xf32>
    %c0_3 = arith.constant 0 : index
    %c0_4 = arith.constant 0 : index
    %3 = vector.load %arg3[%c0_3, %c0_4] : memref<1x512xf32, #tpu.memory_space<vmem>>, vector<1x512xf32>
    %4 = vector.broadcast %3 : vector<1x512xf32> to vector<16x512xf32>
    %5 = arith.addf %2, %4 : vector<16x512xf32>
    %cst_5 = arith.constant 0.000000e+00 : f32
    %6 = vector.broadcast %cst_5 : f32 to vector<16x512xf32>
    %7 = arith.maximumf %5, %6 : vector<16x512xf32>
    %8 = arith.truncf %7 : vector<16x512xf32> to vector<16x512xbf16>
    %c0_6 = arith.constant 0 : index
    %c0_7 = arith.constant 0 : index
    %9 = vector.load %arg4[%c0_6, %c0_7] : memref<512x256xbf16, #tpu.memory_space<vmem>>, vector<512x256xbf16>
    %cst_8 = arith.constant dense<0.000000e+00> : vector<16x256xf32>
    %10 = tpu.matmul %8, %9, %cst_8 {dimension_numbers = #tpu.dot_dimension_numbers<[1], [0], [0], [1], [0, 0, 1, 1], [], []>} : vector<16x512xbf16>, vector<512x256xbf16>, vector<16x256xf32> -> vector<16x256xf32>
    %c0_9 = arith.constant 0 : index
    %c0_10 = arith.constant 0 : index
    %11 = vector.load %arg5[%c0_9, %c0_10] : memref<1x256xf32, #tpu.memory_space<vmem>>, vector<1x256xf32>
    %12 = vector.broadcast %11 : vector<1x256xf32> to vector<16x256xf32>
    %13 = arith.addf %10, %12 : vector<16x256xf32>
    %cst_11 = arith.constant 0.000000e+00 : f32
    %14 = vector.broadcast %cst_11 : f32 to vector<16x256xf32>
    %15 = arith.maximumf %13, %14 : vector<16x256xf32>
    %16 = arith.truncf %15 : vector<16x256xf32> to vector<16x256xbf16>
    %c0_12 = arith.constant 0 : index
    %c0_13 = arith.constant 0 : index
    %17 = vector.load %arg6[%c0_12, %c0_13] : memref<256x128xbf16, #tpu.memory_space<vmem>>, vector<256x128xbf16>
    %cst_14 = arith.constant dense<0.000000e+00> : vector<16x128xf32>
    %18 = tpu.matmul %16, %17, %cst_14 {dimension_numbers = #tpu.dot_dimension_numbers<[1], [0], [0], [1], [0, 0, 1, 1], [], []>} : vector<16x256xbf16>, vector<256x128xbf16>, vector<16x128xf32> -> vector<16x128xf32>
    %c0_15 = arith.constant 0 : index
    %c0_16 = arith.constant 0 : index
    %19 = vector.load %arg7[%c0_15, %c0_16] : memref<1x128xf32, #tpu.memory_space<vmem>>, vector<1x128xf32>
    %20 = vector.broadcast %19 : vector<1x128xf32> to vector<16x128xf32>
    %21 = arith.addf %18, %20 : vector<16x128xf32>
    %cst_17 = arith.constant dense<0xFF800000> : vector<16xf32>
    %22 = vector.multi_reduction <maximumf>, %21, %cst_17 [1] : vector<16x128xf32> to vector<16xf32>
    %23 = vector.shape_cast %22 : vector<16xf32> to vector<16x1xf32>
    %24 = vector.broadcast %23 : vector<16x1xf32> to vector<16x128xf32>
    %25 = arith.subf %21, %24 : vector<16x128xf32>
    %26 = math.exp %25 : vector<16x128xf32>
    %cst_18 = arith.constant dense<0.000000e+00> : vector<16xf32>
    %27 = vector.multi_reduction <add>, %26, %cst_18 [1] : vector<16x128xf32> to vector<16xf32>
    %28 = vector.shape_cast %27 : vector<16xf32> to vector<16x1xf32>
    %29 = vector.broadcast %28 : vector<16x1xf32> to vector<16x128xf32>
    %30 = arith.divf %26, %29 : vector<16x128xf32>
    %c0_19 = arith.constant 0 : index
    %c0_20 = arith.constant 0 : index
    %31 = vector.load %arg8[%c0_19, %c0_20] : memref<16x128xf32, #tpu.memory_space<vmem>>, vector<16x128xf32>
    tpu.vector_store %arg8[%c0_19, %c0_20], %30 {strides = array<i32>} : memref<16x128xf32, #tpu.memory_space<vmem>>, vector<16x128xf32>,
    return
  }
  func.func @transform_0(%arg0: i32) -> (i32, i32) {
    %c0_i32 = arith.constant 0 : i32
    %c0_i32_0 = arith.constant 0 : i32
    return %arg0, %c0_i32 : i32, i32
  }
  func.func @transform_1(%arg0: i32) -> (i32, i32) {
    %c0_i32 = arith.constant 0 : i32
    %c0_i32_0 = arith.constant 0 : i32
    %c0_i32_1 = arith.constant 0 : i32
    return %c0_i32, %c0_i32_0 : i32, i32
  }
  func.func @transform_2(%arg0: i32) -> (i32, i32) {
    %c0_i32 = arith.constant 0 : i32
    %c0_i32_0 = arith.constant 0 : i32
    %c0_i32_1 = arith.constant 0 : i32
    return %c0_i32, %c0_i32_0 : i32, i32
  }
  func.func @transform_3(%arg0: i32) -> (i32, i32) {
    %c0_i32 = arith.constant 0 : i32
    %c0_i32_0 = arith.constant 0 : i32
    %c0_i32_1 = arith.constant 0 : i32
    return %c0_i32, %c0_i32_0 : i32, i32
  }
  func.func @transform_4(%arg0: i32) -> (i32, i32) {
    %c0_i32 = arith.constant 0 : i32
    %c0_i32_0 = arith.constant 0 : i32
    %c0_i32_1 = arith.constant 0 : i32
    return %c0_i32, %c0_i32_0 : i32, i32
  }
  func.func @transform_5(%arg0: i32) -> (i32, i32) {
    %c0_i32 = arith.constant 0 : i32
    %c0_i32_0 = arith.constant 0 : i32
    %c0_i32_1 = arith.constant 0 : i32
    return %c0_i32, %c0_i32_0 : i32, i32
  }
  func.func @transform_6(%arg0: i32) -> (i32, i32) {
    %c0_i32 = arith.constant 0 : i32
    %c0_i32_0 = arith.constant 0 : i32
    %c0_i32_1 = arith.constant 0 : i32
    return %c0_i32, %c0_i32_0 : i32, i32
  }
  func.func @transform_7(%arg0: i32) -> (i32, i32) {
    %c0_i32 = arith.constant 0 : i32
    %c0_i32_0 = arith.constant 0 : i32
    return %arg0, %c0_i32 : i32, i32
  }
}

</mosaic_0001>

<bundles_post_ra>
// kernel: tpu_custom_call.1
= control target key start
LH: loop header
LB: loop body
LE: loop exit
PB: predicated region body
PF: predicated region fallthrough
CT: control target
= control target key end

     0   :  { %12 = vsyncpa [#allocation3], 0  ;;  %s4518_s0 = inlined_call_operand.hbm [shape: bf16[16,896], index: 0, kind: input, shape index: {}]   ;;  %s4519_s1 = inlined_call_operand.hbm [shape: bf16[896,512], index: 1, kind: input, shape index: {}]   ;;  %s4520_s2 = inlined_call_operand.hbm [shape: f32[1,512], index: 2, kind: input, shape index: {}]   ;;  %s4521_s3 = inlined_call_operand.hbm [shape: bf16[512,256], index: 3, kind: input, shape index: {}]   ;;  %s4522_s4 = inlined_call_operand.vmem [shape: f32[1,256], index: 4, kind: input, shape index: {}]   ;;  %s4523_s5 = inlined_call_operand.hbm [shape: bf16[256,128], index: 5, kind: input, shape index: {}]   ;;  %s4524_s6 = inlined_call_operand.vmem [shape: f32[1,128], index: 6, kind: input, shape index: {}]   ;;  %s4525_s7 = inlined_call_operand.hbm [shape: f32[16,128], index: 7, kind: output, shape index: {}]  }
   0x1   :  { %13 = vsyncpa [#allocation6], 0 }
   0x2   :  { %14 = vsyncpa [#allocation9], 0  ;;  %s33_s26 = sshll.u32 %s4519_s1, 4  ;;  %s34_s26 = int_to_ptr.hbm [resolvable:$true] %s33_s26 }
   0x3   :  { %15 = vsyncpa [#allocation4], 0  ;;  %s4370_s27 = smov [#allocation5]   ;;  %s57_s8 = sshll.u32 %s4521_s3, 4  ;;  %s58_s8 = int_to_ptr.hbm [resolvable:$true] %s57_s8 }
   0x4   :  { %s35_s28 = sshll.u32 %s4370_s27, 4  ;;  %s4371_s9 = smov 256   ;;  %s36_s28 = int_to_ptr.vmem [resolvable:$true] %s35_s28 }
   0x5   :  { %s4372_s10 = smov 16   ;;  %s4373_s11 = smov [#allocation8]  }
   0x6   :  { %41 = dma.hbm_to_vmem [thread:$0]  %s34_s26, 28672, %s36_s28, [#allocation6], %s4371_s9, %s4371_s9, %s4372_s10  }
   0x7   :  { %s59_s12 = sshll.u32 %s4373_s11, 4  ;;  %s4374_s13 = smov 128   ;;  %s60_s12 = int_to_ptr.vmem [resolvable:$true] %s59_s12 }
   0x8   :  { %s4375_s14 = smov 8   ;;  %s20_s16 = sshll.u32 %s4518_s0, 4  ;;  %s21_s16 = int_to_ptr.hbm [resolvable:$true] %s20_s16 }
   0x9   :  { %65 = dma.hbm_to_vmem [thread:$0]  %s58_s8, 8192, %s60_s12, [#allocation9], %s4374_s13, %s4374_s13, %s4375_s14  }
   0xa   :  { %s4376_s17 = smov [#allocation2]   ;;  %s47_s20 = sshll.u32 %s4520_s2, 4  ;;  %s48_s20 = int_to_ptr.hbm [resolvable:$true] %s47_s20 }
   0xb   :  { %s22_s3 = sshll.u32 %s4376_s17, 4  ;;  %s4377_s21 = smov 448   ;;  %s23_s3 = int_to_ptr.vmem [resolvable:$true] %s22_s3 }
   0xc   :  { %s4378_s22 = smov 28   ;;  %s4379_s23 = smov [#allocation7]  }
   0xd   :  { %28 = dma.hbm_to_vmem [thread:$0]  %s21_s16, 896, %s23_s3, [#allocation3], %s4377_s21, %s4377_s21, %s4378_s22  }
   0xe   :  { %s49_s24 = sshll.u32 %s4379_s23, 4  ;;  %s72_s27 = sshll.u32 %s4523_s5, 4  ;;  %s50_s24 = int_to_ptr.vmem [resolvable:$true] %s49_s24  ;;  %s73_s27 = int_to_ptr.hbm [resolvable:$true] %s72_s27 }
   0xf   :  { %52 = dma.hbm_to_vmem [thread:$0]  %s48_s20, 64, %s50_s24, [#allocation6]  }
  0x10   :  { %s4380_s0 = smov [#allocation10]   ;;  %s4381_s29 = smov 64  }
  0x11   :  { %s74_s28 = sshll.u32 %s4380_s0, 4  ;;  %s4382_s30 = smov 4   ;;  %s75_s28 = int_to_ptr.vmem [resolvable:$true] %s74_s28 }
  0x12   :  { %80 = dma.hbm_to_vmem [thread:$0]  %s73_s27, 2048, %s75_s28, [#allocation9], %s4381_s29, %s4381_s29, %s4382_s30  }
  0x13   :  { %4362 = dma.done.wait [#allocation3], 896  }
  0x14   :  { %4363 = vsyncadd [#allocation3], 4294966400 }
  0x15   :  { %4364 = dma.done.wait [#allocation6], 28736  }
  0x16   :  { %4365 = vsyncadd [#allocation6], 4294938560 }
  0x17   :  { %4366 = dma.done.wait [#allocation9], 10240  }
  0x18   :  { %4367 = vsyncadd [#allocation9], 4294957056  ;;  %v2782_v0 = vld [vmem:[#allocation5 + $0xe0] sm:$0xf]  ;;  %v3921_v1 = vld [vmem:[#allocation5 + $0xec] sm:$0xf0] }
  0x19   :  { %v2910_v2 = vld [vmem:[#allocation5 + $0x1e0] sm:$0xf]  ;;  %v2783_v3 = vor.u32 %v3921_v1, %v2782_v0  ;;  %v3953_v4 = vld [vmem:[#allocation5 + $0x1ec] sm:$0xf0]  ;;  %s2625_s12 = sshll.u32 %s4525_s7, 4  ;;  %s2626_s12 = int_to_ptr.hbm [resolvable:$true] %s2625_s12 }
  0x1a   :  { %v3038_v5 = vld [vmem:[#allocation5 + $0x2e0] sm:$0xf]  ;;  %v3985_v6 = vld [vmem:[#allocation5 + $0x2ec] sm:$0xf0]  ;;  %v2911_v7 = vor.u32 %v3953_v4, %v2910_v2 }
  0x1b   :  { %v3039_v8 = vor.u32 %v3985_v6, %v3038_v5  ;;  %v3166_v9 = vld [vmem:[#allocation5 + $0x3e0] sm:$0xf]  ;;  %v4017_v10 = vld [vmem:[#allocation5 + $0x3ec] sm:$0xf0]  ;;  %1501 = vmatpush.bf16.msra.mxu0 %v2783_v3 }
  0x1c   :  { %v2766_v11 = vld [vmem:[#allocation5 + $0xc0] sm:$0xf]  ;;  %v3167_v12 = vor.u32 %v4017_v10, %v3166_v9  ;;  %v3917_v13 = vld [vmem:[#allocation5 + $0xcc] sm:$0xf0]  ;;  %1515 = vmatpush.bf16.msra.mxu1 %v2911_v7 }
  0x1d   :  { %v2894_v14 = vld [vmem:[#allocation5 + $0x1c0] sm:$0xf]  ;;  %v3949_v15 = vld [vmem:[#allocation5 + $0x1cc] sm:$0xf0]  ;;  %1529 = vmatpush.bf16.msra.mxu2 %v3039_v8  ;;  %v2767_v16 = vor.u32 %v3917_v13, %v2766_v11 }
  0x1e   :  { %v2895_v17 = vor.u32 %v3949_v15, %v2894_v14  ;;  %v3022_v18 = vld [vmem:[#allocation5 + $0x2c0] sm:$0xf]  ;;  %v3981_v19 = vld [vmem:[#allocation5 + $0x2cc] sm:$0xf0]  ;;  %1543 = vmatpush.bf16.msra.mxu3 %v3167_v12 }
  0x1f   :  { %v3150_v20 = vld [vmem:[#allocation5 + $0x3c0] sm:$0xf]  ;;  %v3023_v21 = vor.u32 %v3981_v19, %v3022_v18  ;;  %v4013_v22 = vld [vmem:[#allocation5 + $0x3cc] sm:$0xf0]  ;;  %1502 = vmatpush.bf16.msra.mxu0 %v2767_v16 }
  0x20   :  { %v2750_v23 = vld [vmem:[#allocation5 + $0xa0] sm:$0xf]  ;;  %v3913_v24 = vld [vmem:[#allocation5 + $0xac] sm:$0xf0]  ;;  %v3151_v25 = vor.u32 %v4013_v22, %v3150_v20  ;;  %1516 = vmatpush.bf16.msra.mxu1 %v2895_v17 }
  0x21   :  { %v2878_v26 = vld [vmem:[#allocation5 + $0x1a0] sm:$0xf]  ;;  %v3945_v27 = vld [vmem:[#allocation5 + $0x1ac] sm:$0xf0]  ;;  %v2751_v29 = vor.u32 %v3913_v24, %v2750_v23  ;;  %1530 = vmatpush.bf16.msra.mxu2 %v3023_v21 }
  0x22   :  { %v3006_v28 = vld [vmem:[#allocation5 + $0x2a0] sm:$0xf]  ;;  %v3977_v30 = vld [vmem:[#allocation5 + $0x2ac] sm:$0xf0]  ;;  %v2879_v33 = vor.u32 %v3945_v27, %v2878_v26  ;;  %1544 = vmatpush.bf16.msra.mxu3 %v3151_v25 }
  0x23   :  { %v3134_v31 = vld [vmem:[#allocation5 + $0x3a0] sm:$0xf]  ;;  %v4009_v32 = vld [vmem:[#allocation5 + $0x3ac] sm:$0xf0]  ;;  %v3007_v34 = vor.u32 %v3977_v30, %v3006_v28  ;;  %1503 = vmatpush.bf16.msra.mxu0 %v2751_v29 }
  0x24   :  { %v2734_v35 = vld [vmem:[#allocation5 + $0x80] sm:$0xf]  ;;  %v3909_v36 = vld [vmem:[#allocation5 + $0x8c] sm:$0xf0]  ;;  %v3135_v38 = vor.u32 %v4009_v32, %v3134_v31  ;;  %1517 = vmatpush.bf16.msra.mxu1 %v2879_v33 }
  0x25   :  { %v2862_v37 = vld [vmem:[#allocation5 + $0x180] sm:$0xf]  ;;  %v3941_v39 = vld [vmem:[#allocation5 + $0x18c] sm:$0xf0]  ;;  %v2735_v44 = vor.u32 %v3909_v36, %v2734_v35  ;;  %1531 = vmatpush.bf16.msra.mxu2 %v3007_v34 }
  0x26   :  { %v2990_v40 = vld [vmem:[#allocation5 + $0x280] sm:$0xf]  ;;  %v3973_v41 = vld [vmem:[#allocation5 + $0x28c] sm:$0xf0]  ;;  %v2863_v45 = vor.u32 %v3941_v39, %v2862_v37  ;;  %1545 = vmatpush.bf16.msra.mxu3 %v3135_v38  ;;  %v3919_v37 = vld [vmem:[#allocation5 + $0xe4] sm:$0xf] }
  0x27   :  { %v3118_v42 = vld [vmem:[#allocation5 + $0x380] sm:$0xf]  ;;  %v4005_v43 = vld [vmem:[#allocation5 + $0x38c] sm:$0xf0]  ;;  %v2991_v46 = vor.u32 %v3973_v41, %v2990_v40  ;;  %1504 = vmatpush.bf16.msra.mxu0 %v2735_v44  ;;  %v2784_v38 = vld [vmem:[#allocation5 + $0xf0] sm:$0xf0] }
  0x28   :  { %v2718_v47 = vld [vmem:[#allocation5 + $0x60] sm:$0xf]  ;;  %v3905_v48 = vld [vmem:[#allocation5 + $0x6c] sm:$0xf0]  ;;  %v3119_v50 = vor.u32 %v4005_v43, %v3118_v42  ;;  %1518 = vmatpush.bf16.msra.mxu1 %v2863_v45 }
  0x29   :  { %v2846_v49 = vld [vmem:[#allocation5 + $0x160] sm:$0xf]  ;;  %v3937_v51 = vld [vmem:[#allocation5 + $0x16c] sm:$0xf0]  ;;  %v2719_v56 = vor.u32 %v3905_v48, %v2718_v47  ;;  %1532 = vmatpush.bf16.msra.mxu2 %v2991_v46  ;;  %v2787_v48 = vor.u32 %v3919_v37, %v2784_v38 }
  0x2a   :  { %v2974_v52 = vld [vmem:[#allocation5 + $0x260] sm:$0xf]  ;;  %v3969_v53 = vld [vmem:[#allocation5 + $0x26c] sm:$0xf0]  ;;  %v2847_v57 = vor.u32 %v3937_v51, %v2846_v49  ;;  %1546 = vmatpush.bf16.msra.mxu3 %v3119_v50  ;;  %v3915_v50 = vld [vmem:[#allocation5 + $0xc4] sm:$0xf] }
  0x2b   :  { %v3102_v54 = vld [vmem:[#allocation5 + $0x360] sm:$0xf]  ;;  %v4001_v55 = vld [vmem:[#allocation5 + $0x36c] sm:$0xf0]  ;;  %v2975_v58 = vor.u32 %v3969_v53, %v2974_v52  ;;  %1505 = vmatpush.bf16.msra.mxu0 %v2719_v56  ;;  %v2768_v51 = vld [vmem:[#allocation5 + $0xd0] sm:$0xf0] }
  0x2c   :  { %v2702_v59 = vld [vmem:[#allocation5 + $0x40] sm:$0xf]  ;;  %v3901_v60 = vld [vmem:[#allocation5 + $0x4c] sm:$0xf0]  ;;  %v3103_v62 = vor.u32 %v4001_v55, %v3102_v54  ;;  %1519 = vmatpush.bf16.msra.mxu1 %v2847_v57  ;;  %v2642_v52 = vld [vmem:[#allocation2] sm:$0xf] }
  0x2d   :  { %v2830_v61 = vld [vmem:[#allocation5 + $0x140] sm:$0xf]  ;;  %v3933_v63 = vld [vmem:[#allocation5 + $0x14c] sm:$0xf0]  ;;  %v2703_v4 = vor.u32 %v3901_v60, %v2702_v59  ;;  %1533 = vmatpush.bf16.msra.mxu2 %v2975_v58  ;;  %v3887_v53 = vld [vmem:[#allocation2 + $0x18] sm:$0xf0] }
  0x2e   :  { %v2958_v0 = vld [vmem:[#allocation5 + $0x240] sm:$0xf]  ;;  %v3965_v1 = vld [vmem:[#allocation5 + $0x24c] sm:$0xf0]  ;;  %v2831_v5 = vor.u32 %v3933_v63, %v2830_v61  ;;  %1547 = vmatpush.bf16.msra.mxu3 %v3103_v62  ;;  %v4442_v57 = vor.u32 %v3887_v53, %v2642_v52  ;;  %v3888_v58 = vld [vmem:[#allocation2 + $0x20] sm:$0xf0] }
  0x2f   :  { %v3086_v2 = vld [vmem:[#allocation5 + $0x340] sm:$0xf]  ;;  %v3997_v3 = vld [vmem:[#allocation5 + $0x34c] sm:$0xf0]  ;;  %v2959_v6 = vor.u32 %v3965_v1, %v2958_v0  ;;  %1506 = vmatpush.bf16.msra.mxu0 %v2703_v4  ;;  %v2771_v1 = vor.u32 %v3915_v50, %v2768_v51  ;;  %v3911_v4 = vld [vmem:[#allocation5 + $0xa4] sm:$0xf] }
  0x30   :  { %v2686_v7 = vld [vmem:[#allocation5 + $0x20] sm:$0xf]  ;;  %v3897_v8 = vld [vmem:[#allocation5 + $0x2c] sm:$0xf0]  ;;  %v3087_v10 = vor.u32 %v3997_v3, %v3086_v2  ;;  %1520 = vmatpush.bf16.msra.mxu1 %v2831_v5  ;;  %v2752_v5 = vld [vmem:[#allocation5 + $0xb0] sm:$0xf0] }
  0x31   :  { %v2814_v9 = vld [vmem:[#allocation5 + $0x120] sm:$0xf]  ;;  %v3929_v11 = vld [vmem:[#allocation5 + $0x12c] sm:$0xf0]  ;;  %v2687_v16 = vor.u32 %v3897_v8, %v2686_v7  ;;  %1534 = vmatpush.bf16.msra.mxu2 %v2959_v6  ;;  %v3884_v6 = vld [vmem:[#allocation2 + $0x4] sm:$0xf] }
  0x32   :  { %v2942_v12 = vld [vmem:[#allocation5 + $0x220] sm:$0xf]  ;;  %v3961_v13 = vld [vmem:[#allocation5 + $0x22c] sm:$0xf0]  ;;  %v2815_v19 = vor.u32 %v3929_v11, %v2814_v9  ;;  %1548 = vmatpush.bf16.msra.mxu3 %v3087_v10  ;;  %v2644_v7 = vld [vmem:[#allocation2 + $0x1c] sm:$0xf0] }
  0x33   :  { %v3070_v14 = vld [vmem:[#allocation5 + $0x320] sm:$0xf]  ;;  %v3993_v15 = vld [vmem:[#allocation5 + $0x32c] sm:$0xf0]  ;;  %v2943_v20 = vor.u32 %v3961_v13, %v2942_v12  ;;  %1507 = vmatpush.bf16.msra.mxu0 %v2687_v16  ;;  %v4448_v11 = vor.u32 %v3884_v6, %v2644_v7  ;;  %v3891_v7 = vld [vmem:[#allocation5 + $0x4] sm:$0xf] }
  0x34   :  { %v2670_v17 = vld [vmem:[#allocation5] sm:$0xf]  ;;  %v3893_v18 = vld [vmem:[#allocation5 + $0xc] sm:$0xf0]  ;;  %v3071_v24 = vor.u32 %v3993_v15, %v3070_v14  ;;  %1521 = vmatpush.bf16.msra.mxu1 %v2815_v19  ;;  %v3885_v19 = vld [vmem:[#allocation2 + $0xc] sm:$0xf] }
  0x35   :  { %v2798_v21 = vld [vmem:[#allocation5 + $0x100] sm:$0xf]  ;;  %v3925_v22 = vld [vmem:[#allocation5 + $0x10c] sm:$0xf0]  ;;  %v2671_v31 = vor.u32 %v3893_v18, %v2670_v17  ;;  %1535 = vmatpush.bf16.msra.mxu2 %v2943_v20  ;;  %v2755_v17 = vor.u32 %v3911_v4, %v2752_v5 }
  0x36   :  { %v2926_v23 = vld [vmem:[#allocation5 + $0x200] sm:$0xf]  ;;  %v3957_v25 = vld [vmem:[#allocation5 + $0x20c] sm:$0xf0]  ;;  %v2799_v35 = vor.u32 %v3925_v22, %v2798_v21  ;;  %1549 = vmatpush.bf16.msra.mxu3 %v3071_v24  ;;  %v3907_v21 = vld [vmem:[#allocation5 + $0x84] sm:$0xf] }
  0x37   :  { %v3054_v26 = vld [vmem:[#allocation5 + $0x300] sm:$0xf]  ;;  %v3989_v27 = vld [vmem:[#allocation5 + $0x30c] sm:$0xf0]  ;;  %v2927_v36 = vor.u32 %v3957_v25, %v2926_v23  ;;  %1508 = vmatpush.bf16.msra.mxu0 %v2671_v31  ;;  %v2736_v22 = vld [vmem:[#allocation5 + $0x90] sm:$0xf0] }
  0x38   :  { %v3294_v28 = vld [vmem:[#allocation5 + $0x4e0] sm:$0xf]  ;;  %v4049_v29 = vld [vmem:[#allocation5 + $0x4ec] sm:$0xf0]  ;;  %v3055_v39 = vor.u32 %v3989_v27, %v3054_v26  ;;  %1522 = vmatpush.bf16.msra.mxu1 %v2799_v35  ;;  %v2720_v35 = vld [vmem:[#allocation5 + $0x70] sm:$0xf0] }
  0x39   :  { %v3422_v30 = vld [vmem:[#allocation5 + $0x5e0] sm:$0xf]  ;;  %v4081_v32 = vld [vmem:[#allocation5 + $0x5ec] sm:$0xf0]  ;;  %v3295_v40 = vor.u32 %v4049_v29, %v3294_v28  ;;  %1536 = vmatpush.bf16.msra.mxu2 %v2927_v36 }
  0x3a   :  { %v3550_v33 = vld [vmem:[#allocation5 + $0x6e0] sm:$0xf]  ;;  %v4113_v34 = vld [vmem:[#allocation5 + $0x6ec] sm:$0xf0]  ;;  %v3423_v43 = vor.u32 %v4081_v32, %v3422_v30  ;;  %1550 = vmatpush.bf16.msra.mxu3 %v3055_v39  ;;  %1509 = vmatmul.bf16.vlgmr.msra.gmra.mxu0 %v4442_v57  ;;  %v2739_v30 = vor.u32 %v3907_v21, %v2736_v22  ;;  %v2658_v22 = vld [vmem:[#allocation2 + $0x10] sm:$0xf] }
  0x3b   :  { %v3278_v41 = vld [vmem:[#allocation5 + $0x4c0] sm:$0xf]  ;;  %v4045_v42 = vld [vmem:[#allocation5 + $0x4cc] sm:$0xf0]  ;;  %v3551_v44 = vor.u32 %v4113_v34, %v3550_v33  ;;  %1557 = vmatpush.bf16.msrb.mxu0 %v3295_v40  ;;  %1523 = vmatmul.bf16.vlgmr.msra.gmra.mxu1 %v4448_v11  ;;  %v3903_v34 = vld [vmem:[#allocation5 + $0x64] sm:$0xf] }
  0x3c   :  { %v3406_v45 = vld [vmem:[#allocation5 + $0x5c0] sm:$0xf]  ;;  %v4077_v46 = vld [vmem:[#allocation5 + $0x5cc] sm:$0xf0]  ;;  %v3279_v55 = vor.u32 %v4045_v42, %v3278_v41  ;;  %1571 = vmatpush.bf16.msrb.mxu1 %v3423_v43  ;;  %v2723_v42 = vor.u32 %v3903_v34, %v2720_v35  ;;  %v2896_v34 = vld [vmem:[#allocation5 + $0x1d0] sm:$0xf0] }
  0x3d   :  { %v3534_v47 = vld [vmem:[#allocation5 + $0x6c0] sm:$0xf]  ;;  %v4109_v49 = vld [vmem:[#allocation5 + $0x6cc] sm:$0xf0]  ;;  %1585 = vmatpush.bf16.msrb.mxu2 %v3551_v44  ;;  %v3407_v59 = vor.u32 %v4077_v46, %v3406_v45  ;;  %v3899_v46 = vld [vmem:[#allocation5 + $0x44] sm:$0xf] }
  0x3e   :  { %v2650_v54 = vld [vmem:[#allocation2 + $0x8] sm:$0xf]  ;;  %v3262_v56 = vld [vmem:[#allocation5 + $0x4a0] sm:$0xf]  ;;  %v3535_v60 = vor.u32 %v4109_v49, %v3534_v47  ;;  %1599 = vmatpush.bf16.msrb.mxu3 %v2787_v48  ;;  %v2704_v47 = vld [vmem:[#allocation5 + $0x50] sm:$0xf0] }
  0x3f   :  { %v4041_v61 = vld [vmem:[#allocation5 + $0x4ac] sm:$0xf0]  ;;  %v3390_v62 = vld [vmem:[#allocation5 + $0x5a0] sm:$0xf]  ;;  %v4444_v0 = vor.u32 %v3888_v58, %v2650_v54  ;;  %1558 = vmatpush.bf16.msrb.mxu0 %v3279_v55  ;;  %v2707_v54 = vor.u32 %v3899_v46, %v2704_v47  ;;  %v3979_v35 = vld [vmem:[#allocation5 + $0x2c4] sm:$0xf] }
  0x40   :  { %v4073_v63 = vld [vmem:[#allocation5 + $0x5ac] sm:$0xf0]  ;;  %v3518_v2 = vld [vmem:[#allocation5 + $0x6a0] sm:$0xf]  ;;  %v3263_v8 = vor.u32 %v4041_v61, %v3262_v56  ;;  %1572 = vmatpush.bf16.msrb.mxu1 %v3407_v59  ;;  %v3895_v59 = vld [vmem:[#allocation5 + $0x24] sm:$0xf] }
  0x41   :  { %v4105_v3 = vld [vmem:[#allocation5 + $0x6ac] sm:$0xf0]  ;;  %1537 = vmatmul.bf16.vlgmr.msra.gmra.mxu2 %v4444_v0  ;;  %v3246_v9 = vld [vmem:[#allocation5 + $0x480] sm:$0xf]  ;;  %v3391_v12 = vor.u32 %v4073_v63, %v3390_v62 }
  0x42   :  { %v4037_v10 = vld [vmem:[#allocation5 + $0x48c] sm:$0xf0]  ;;  %1586 = vmatpush.bf16.msrb.mxu2 %v3535_v60  ;;  %v3519_v13 = vor.u32 %v4105_v3, %v3518_v2  ;;  %v3374_v14 = vld [vmem:[#allocation5 + $0x580] sm:$0xf]  ;;  %1600 = vmatpush.bf16.msrb.mxu3 %v2771_v1  ;;  %v2688_v60 = vld [vmem:[#allocation5 + $0x30] sm:$0xf0] }
  0x43   :  { %v4069_v15 = vld [vmem:[#allocation5 + $0x58c] sm:$0xf0]  ;;  %v3502_v16 = vld [vmem:[#allocation5 + $0x680] sm:$0xf]  ;;  %1559 = vmatpush.bf16.msrb.mxu0 %v3263_v8  ;;  %v3247_v24 = vor.u32 %v4037_v10, %v3246_v9  ;;  %v2691_v8 = vor.u32 %v3895_v59, %v2688_v60  ;;  %v2672_v9 = vld [vmem:[#allocation5 + $0x10] sm:$0xf0] }
  0x44   :  { %v4101_v18 = vld [vmem:[#allocation5 + $0x68c] sm:$0xf0]  ;;  %1573 = vmatpush.bf16.msrb.mxu1 %v3391_v12  ;;  %v3375_v25 = vor.u32 %v4069_v15, %v3374_v14  ;;  %v3230_v27 = vld [vmem:[#allocation5 + $0x460] sm:$0xf]  ;;  %v3951_v10 = vld [vmem:[#allocation5 + $0x1e4] sm:$0xf] }
  0x45   :  { %v2652_v20 = vld [vmem:[#allocation2 + $0x24] sm:$0xf0]  ;;  %v3503_v26 = vor.u32 %v4101_v18, %v3502_v16  ;;  %v3358_v29 = vld [vmem:[#allocation5 + $0x560] sm:$0xf]  ;;  %v2912_v12 = vld [vmem:[#allocation5 + $0x1f0] sm:$0xf0] }
  0x46   :  { %v4451_v23 = vor.u32 %v3885_v19, %v2652_v20  ;;  %1587 = vmatpush.bf16.msrb.mxu2 %v3519_v13  ;;  %v4033_v28 = vld [vmem:[#allocation5 + $0x46c] sm:$0xf0]  ;;  %1601 = vmatpush.bf16.msrb.mxu3 %v2755_v17  ;;  %v3486_v32 = vld [vmem:[#allocation5 + $0x660] sm:$0xf]  ;;  %v3983_v13 = vld [vmem:[#allocation5 + $0x2e4] sm:$0xf] }
  0x47   :  { %v4065_v31 = vld [vmem:[#allocation5 + $0x56c] sm:$0xf0]  ;;  %1560 = vmatpush.bf16.msrb.mxu0 %v3247_v24  ;;  %v3231_v36 = vor.u32 %v4033_v28, %v3230_v27  ;;  %v3214_v39 = vld [vmem:[#allocation5 + $0x440] sm:$0xf]  ;;  %v3040_v14 = vld [vmem:[#allocation5 + $0x2f0] sm:$0xf0]  ;;  %v2915_v27 = vor.u32 %v3951_v10, %v2912_v12 }
  0x48   :  { %v4097_v33 = vld [vmem:[#allocation5 + $0x66c] sm:$0xf0]  ;;  %1551 = vmatmul.bf16.vlgmr.msra.gmra.mxu3 %v4451_v23  ;;  %1574 = vmatpush.bf16.msrb.mxu1 %v3375_v25  ;;  %v3359_v37 = vor.u32 %v4065_v31, %v3358_v29  ;;  %v3342_v41 = vld [vmem:[#allocation5 + $0x540] sm:$0xf]  ;;  %v4015_v15 = vld [vmem:[#allocation5 + $0x3e4] sm:$0xf]  ;;  %v3043_v31 = vor.u32 %v3983_v13, %v3040_v14 }
  0x49   :  { %v3487_v38 = vor.u32 %v4097_v33, %v3486_v32  ;;  %v4029_v40 = vld [vmem:[#allocation5 + $0x44c] sm:$0xf0]  ;;  %v3470_v44 = vld [vmem:[#allocation5 + $0x640] sm:$0xf]  ;;  %v3168_v17 = vld [vmem:[#allocation5 + $0x3f0] sm:$0xf0] }
  0x4a   :  { %1588 = vmatpush.bf16.msrb.mxu2 %v3503_v26  ;;  %1602 = vmatpush.bf16.msrb.mxu3 %v2739_v30  ;;  %v4061_v43 = vld [vmem:[#allocation5 + $0x54c] sm:$0xf0]  ;;  %v3215_v48 = vor.u32 %v4029_v40, %v3214_v39  ;;  %v3198_v51 = vld [vmem:[#allocation5 + $0x420] sm:$0xf]  ;;  %v4047_v18 = vld [vmem:[#allocation5 + $0x4e4] sm:$0xf]  ;;  %v2675_v26 = vor.u32 %v3891_v7, %v2672_v9  ;;  %v3171_v32 = vor.u32 %v4015_v15, %v3168_v17 }
  0x4b   :  { %v4093_v45 = vld [vmem:[#allocation5 + $0x64c] sm:$0xf0]  ;;  %1561 = vmatpush.bf16.msrb.mxu0 %v3231_v36  ;;  %v3343_v49 = vor.u32 %v4061_v43, %v3342_v41  ;;  %v3326_v53 = vld [vmem:[#allocation5 + $0x520] sm:$0xf]  ;;  %v3296_v19 = vld [vmem:[#allocation5 + $0x4f0] sm:$0xf0] }
  0x4c   :  { %1575 = vmatpush.bf16.msrb.mxu1 %v3359_v37  ;;  %v3471_v50 = vor.u32 %v4093_v45, %v3470_v44  ;;  %v4025_v52 = vld [vmem:[#allocation5 + $0x42c] sm:$0xf0]  ;;  %v3454_v56 = vld [vmem:[#allocation5 + $0x620] sm:$0xf]  ;;  %v3889_v24 = vld [vmem:[#allocation2 + $0x28] sm:$0xf0]  ;;  %v3299_v36 = vor.u32 %v4047_v18, %v3296_v19 }
  0x4d   :  { %v4057_v55 = vld [vmem:[#allocation5 + $0x52c] sm:$0xf0]  ;;  %v3182_v61 = vld [vmem:[#allocation5 + $0x400] sm:$0xf]  ;;  %v3199_v62 = vor.u32 %v4025_v52, %v3198_v51  ;;  %v3890_v28 = vld [vmem:[#allocation2 + $0x30] sm:$0xf0]  ;;  %v4454_v37 = vor.u32 %v3889_v24, %v2658_v22 }
  0x4e   :  { %1589 = vmatpush.bf16.msrb.mxu2 %v3487_v38  ;;  %1603 = vmatpush.bf16.msrb.mxu3 %v2723_v42  ;;  %v4089_v58 = vld [vmem:[#allocation5 + $0x62c] sm:$0xf0]  ;;  %v3310_v1 = vld [vmem:[#allocation5 + $0x500] sm:$0xf]  ;;  %v3327_v3 = vor.u32 %v4057_v55, %v3326_v53  ;;  %v3886_v29 = vld [vmem:[#allocation2 + $0x14] sm:$0xf] }
  0x4f   :  { %1562 = vmatpush.bf16.msrb.mxu0 %v3215_v48  ;;  %v4021_v63 = vld [vmem:[#allocation5 + $0x40c] sm:$0xf0]  ;;  %v3455_v4 = vor.u32 %v4089_v58, %v3454_v56  ;;  %v3438_v5 = vld [vmem:[#allocation5 + $0x600] sm:$0xf]  ;;  %v2660_v30 = vld [vmem:[#allocation2 + $0x2c] sm:$0xf0] }
  0x50   :  { %v4053_v2 = vld [vmem:[#allocation5 + $0x50c] sm:$0xf0]  ;;  %1576 = vmatpush.bf16.msrb.mxu1 %v3343_v49  ;;  %v3183_v16 = vor.u32 %v4021_v63, %v3182_v61  ;;  %v2666_v25 = vld [vmem:[#allocation2 + $0x18] sm:$0xf]  ;;  %v3947_v33 = vld [vmem:[#allocation5 + $0x1c4] sm:$0xf]  ;;  %v4458_v42 = vor.u32 %v3886_v29, %v2660_v30 }
  0x51   :  { %v4085_v6 = vld [vmem:[#allocation5 + $0x60c] sm:$0xf0]  ;;  %v3311_v20 = vor.u32 %v4053_v2, %v3310_v1  ;;  %v3024_v38 = vld [vmem:[#allocation5 + $0x2d0] sm:$0xf0]  ;;  %v4011_v39 = vld [vmem:[#allocation5 + $0x3c4] sm:$0xf]  ;;  %v4456_v41 = vor.u32 %v3890_v28, %v2666_v25  ;;  %v2899_v45 = vor.u32 %v3947_v33, %v2896_v34 }
  0x52   :  { %1590 = vmatpush.bf16.msrb.mxu2 %v3471_v50  ;;  %1604 = vmatpush.bf16.msrb.mxu3 %v2707_v54  ;;  %v3439_v21 = vor.u32 %v4085_v6, %v3438_v5  ;;  %v3152_v40 = vld [vmem:[#allocation5 + $0x3d0] sm:$0xf0]  ;;  %v4043_v43 = vld [vmem:[#allocation5 + $0x4c4] sm:$0xf]  ;;  %v3027_v46 = vor.u32 %v3979_v35, %v3024_v38 }
  0x53   :  { %1563 = vmatpush.bf16.msrb.mxu0 %v3199_v62  ;;  %v3280_v44 = vld [vmem:[#allocation5 + $0x4d0] sm:$0xf0]  ;;  %v3155_v47 = vor.u32 %v4011_v39, %v3152_v40  ;;  %v3943_v48 = vld [vmem:[#allocation5 + $0x1a4] sm:$0xf] }
  0x54   :  { %1577 = vmatpush.bf16.msrb.mxu1 %v3327_v3  ;;  %v2880_v49 = vld [vmem:[#allocation5 + $0x1b0] sm:$0xf0]  ;;  %v3975_v50 = vld [vmem:[#allocation5 + $0x2a4] sm:$0xf]  ;;  %v3283_v51 = vor.u32 %v4043_v43, %v3280_v44 }
  0x55   :  { %v3008_v52 = vld [vmem:[#allocation5 + $0x2b0] sm:$0xf0]  ;;  %v4007_v53 = vld [vmem:[#allocation5 + $0x3a4] sm:$0xf]  ;;  %v2883_v58 = vor.u32 %v3943_v48, %v2880_v49 }
  0x56   :  { %1591 = vmatpush.bf16.msrb.mxu2 %v3455_v4  ;;  %1605 = vmatpush.bf16.msrb.mxu3 %v2691_v8  ;;  %v3136_v54 = vld [vmem:[#allocation5 + $0x3b0] sm:$0xf0]  ;;  %v4039_v55 = vld [vmem:[#allocation5 + $0x4a4] sm:$0xf]  ;;  %v3011_v59 = vor.u32 %v3975_v50, %v3008_v52 }
  0x57   :  { %1564 = vmatpush.bf16.msrb.mxu0 %v3183_v16  ;;  %v3264_v56 = vld [vmem:[#allocation5 + $0x4b0] sm:$0xf0]  ;;  %v3139_v60 = vor.u32 %v4007_v53, %v3136_v54  ;;  %v3939_v61 = vld [vmem:[#allocation5 + $0x184] sm:$0xf] }
  0x58   :  { %1578 = vmatpush.bf16.msrb.mxu1 %v3311_v20  ;;  %v2864_v62 = vld [vmem:[#allocation5 + $0x190] sm:$0xf0]  ;;  %v3971_v63 = vld [vmem:[#allocation5 + $0x284] sm:$0xf]  ;;  %v3267_v1 = vor.u32 %v4039_v55, %v3264_v56 }
  0x59   :  { %v2992_v2 = vld [vmem:[#allocation5 + $0x290] sm:$0xf0]  ;;  %v4003_v3 = vld [vmem:[#allocation5 + $0x384] sm:$0xf]  ;;  %v2867_v7 = vor.u32 %v3939_v61, %v2864_v62 }
  0x5a   :  { %1592 = vmatpush.bf16.msrb.mxu2 %v3439_v21  ;;  %1606 = vmatpush.bf16.msrb.mxu3 %v2675_v26  ;;  %v3120_v4 = vld [vmem:[#allocation5 + $0x390] sm:$0xf0]  ;;  %v4035_v5 = vld [vmem:[#allocation5 + $0x484] sm:$0xf]  ;;  %v2995_v8 = vor.u32 %v3971_v63, %v2992_v2 }
  0x5b   :  { %1613 = vmatpush.bf16.msra.mxu0 %v2915_v27  ;;  %1579 = vmatmul.bf16.vlgmr.msrb.gmra.mxu1 %v4458_v42  ;;  %v3248_v6 = vld [vmem:[#allocation5 + $0x490] sm:$0xf0]  ;;  %v3123_v9 = vor.u32 %v4003_v3, %v3120_v4  ;;  %v3935_v10 = vld [vmem:[#allocation5 + $0x164] sm:$0xf]  ;;  %v2790_v3 = vld [vmem:[#allocation5 + $0xe8] sm:$0xf] }
  0x5c   :  { %1627 = vmatpush.bf16.msra.mxu1 %v3043_v31  ;;  %1565 = vmatmul.bf16.vlgmr.msrb.gmra.mxu0 %v4454_v37  ;;  %v2848_v12 = vld [vmem:[#allocation5 + $0x170] sm:$0xf0]  ;;  %v3967_v13 = vld [vmem:[#allocation5 + $0x264] sm:$0xf]  ;;  %v3251_v14 = vor.u32 %v4035_v5, %v3248_v6  ;;  %v3922_v4 = vld [vmem:[#allocation5 + $0xf4] sm:$0xf0] }
  0x5d   :  { %1593 = vmatmul.bf16.vlgmr.msrb.gmra.mxu2 %v4456_v41  ;;  %1607 = vmatmul.bf16.vlgmr.msrb.gmra.mxu3 %v4442_v57  ;;  %v2976_v15 = vld [vmem:[#allocation5 + $0x270] sm:$0xf0]  ;;  %v3999_v16 = vld [vmem:[#allocation5 + $0x364] sm:$0xf]  ;;  %v2851_v20 = vor.u32 %v3935_v10, %v2848_v12 }
  0x5e   :  { %1641 = vmatpush.bf16.msra.mxu2 %v3171_v32  ;;  %1655 = vmatpush.bf16.msra.mxu3 %v3299_v36  ;;  %v3104_v17 = vld [vmem:[#allocation5 + $0x370] sm:$0xf0]  ;;  %v4031_v18 = vld [vmem:[#allocation5 + $0x464] sm:$0xf]  ;;  %v2979_v21 = vor.u32 %v3967_v13, %v2976_v15  ;;  %v2791_v13 = vor.u32 %v3922_v4, %v2790_v3 }
  0x5f   :  { %1614 = vmatpush.bf16.msra.mxu0 %v2899_v45  ;;  %v3232_v19 = vld [vmem:[#allocation5 + $0x470] sm:$0xf0]  ;;  %v3107_v22 = vor.u32 %v3999_v16, %v3104_v17  ;;  %v3931_v24 = vld [vmem:[#allocation5 + $0x144] sm:$0xf] }
  0x60   :  { %1628 = vmatpush.bf16.msra.mxu1 %v3027_v46  ;;  %v2832_v25 = vld [vmem:[#allocation5 + $0x150] sm:$0xf0]  ;;  %v3963_v26 = vld [vmem:[#allocation5 + $0x244] sm:$0xf]  ;;  %v3235_v27 = vor.u32 %v4031_v18, %v3232_v19  ;;  %v2774_v19 = vld [vmem:[#allocation5 + $0xc8] sm:$0xf] }
  0x61   :  { %v2960_v28 = vld [vmem:[#allocation5 + $0x250] sm:$0xf0]  ;;  %v3995_v29 = vld [vmem:[#allocation5 + $0x344] sm:$0xf]  ;;  %v2835_v33 = vor.u32 %v3931_v24, %v2832_v25 }
  0x62   :  { %1642 = vmatpush.bf16.msra.mxu2 %v3155_v47  ;;  %1656 = vmatpush.bf16.msra.mxu3 %v3283_v51  ;;  %v3088_v30 = vld [vmem:[#allocation5 + $0x350] sm:$0xf0]  ;;  %v4027_v31 = vld [vmem:[#allocation5 + $0x444] sm:$0xf]  ;;  %v2963_v34 = vor.u32 %v3963_v26, %v2960_v28 }
  0x63   :  { %1615 = vmatpush.bf16.msra.mxu0 %v2883_v58  ;;  %v3216_v32 = vld [vmem:[#allocation5 + $0x450] sm:$0xf0]  ;;  %v3091_v35 = vor.u32 %v3995_v29, %v3088_v30  ;;  %v3927_v36 = vld [vmem:[#allocation5 + $0x124] sm:$0xf] }
  0x64   :  { %1629 = vmatpush.bf16.msra.mxu1 %v3011_v59  ;;  %v2816_v38 = vld [vmem:[#allocation5 + $0x130] sm:$0xf0]  ;;  %v3959_v39 = vld [vmem:[#allocation5 + $0x224] sm:$0xf]  ;;  %v3219_v40 = vor.u32 %v4027_v31, %v3216_v32  ;;  %v2758_v32 = vld [vmem:[#allocation5 + $0xa8] sm:$0xf] }
  0x65   :  { %v2944_v43 = vld [vmem:[#allocation5 + $0x230] sm:$0xf0]  ;;  %v3991_v44 = vld [vmem:[#allocation5 + $0x324] sm:$0xf]  ;;  %v2819_v48 = vor.u32 %v3927_v36, %v2816_v38 }
  0x66   :  { %1643 = vmatpush.bf16.msra.mxu2 %v3139_v60  ;;  %1657 = vmatpush.bf16.msra.mxu3 %v3267_v1  ;;  %v3072_v45 = vld [vmem:[#allocation5 + $0x330] sm:$0xf0]  ;;  %v4023_v46 = vld [vmem:[#allocation5 + $0x424] sm:$0xf]  ;;  %v2947_v51 = vor.u32 %v3959_v39, %v2944_v43 }
  0x67   :  { %1616 = vmatpush.bf16.msra.mxu0 %v2867_v7  ;;  %v3200_v47 = vld [vmem:[#allocation5 + $0x430] sm:$0xf0]  ;;  %v3923_v49 = vld [vmem:[#allocation5 + $0x104] sm:$0xf]  ;;  %v3075_v52 = vor.u32 %v3991_v44, %v3072_v45  ;;  %v2918_v7 = vld [vmem:[#allocation5 + $0x1e8] sm:$0xf] }
  0x68   :  { %1630 = vmatpush.bf16.msra.mxu1 %v2995_v8  ;;  %v2800_v50 = vld [vmem:[#allocation5 + $0x110] sm:$0xf0]  ;;  %v3955_v53 = vld [vmem:[#allocation5 + $0x204] sm:$0xf]  ;;  %v3203_v56 = vor.u32 %v4023_v46, %v3200_v47  ;;  %v3954_v8 = vld [vmem:[#allocation5 + $0x1f4] sm:$0xf0] }
  0x69   :  { %v2928_v54 = vld [vmem:[#allocation5 + $0x210] sm:$0xf0]  ;;  %v3987_v55 = vld [vmem:[#allocation5 + $0x304] sm:$0xf]  ;;  %v2803_v1 = vor.u32 %v3923_v49, %v2800_v50  ;;  %v2919_v17 = vor.u32 %v3954_v8, %v2918_v7  ;;  %v2742_v47 = vld [vmem:[#allocation5 + $0x88] sm:$0xf] }
  0x6a   :  { %1644 = vmatpush.bf16.msra.mxu2 %v3123_v9  ;;  %1658 = vmatpush.bf16.msra.mxu3 %v3251_v14  ;;  %v3056_v58 = vld [vmem:[#allocation5 + $0x310] sm:$0xf0]  ;;  %v4019_v59 = vld [vmem:[#allocation5 + $0x404] sm:$0xf]  ;;  %v2931_v5 = vor.u32 %v3955_v53, %v2928_v54  ;;  %v2870_v49 = vld [vmem:[#allocation5 + $0x188] sm:$0xf] }
  0x6b   :  { %1617 = vmatpush.bf16.msra.mxu0 %v2851_v20  ;;  %v3184_v60 = vld [vmem:[#allocation5 + $0x410] sm:$0xf0]  ;;  %v4079_v61 = vld [vmem:[#allocation5 + $0x5e4] sm:$0xf]  ;;  %v3059_v6 = vor.u32 %v3987_v55, %v3056_v58  ;;  %v3918_v20 = vld [vmem:[#allocation5 + $0xd4] sm:$0xf0] }
  0x6c   :  { %1631 = vmatpush.bf16.msra.mxu1 %v2979_v21  ;;  %v3424_v62 = vld [vmem:[#allocation5 + $0x5f0] sm:$0xf0]  ;;  %v4111_v63 = vld [vmem:[#allocation5 + $0x6e4] sm:$0xf]  ;;  %v3187_v9 = vor.u32 %v4019_v59, %v3184_v60  ;;  %v2902_v21 = vld [vmem:[#allocation5 + $0x1c8] sm:$0xf]  ;;  %v2775_v26 = vor.u32 %v3918_v20, %v2774_v19 }
  0x6d   :  { %v3552_v2 = vld [vmem:[#allocation5 + $0x6f0] sm:$0xf0]  ;;  %v3427_v10 = vor.u32 %v4079_v61, %v3424_v62  ;;  %v4075_v14 = vld [vmem:[#allocation5 + $0x5c4] sm:$0xf]  ;;  %v3942_v50 = vld [vmem:[#allocation5 + $0x194] sm:$0xf0] }
  0x6e   :  { %1645 = vmatpush.bf16.msra.mxu2 %v3107_v22  ;;  %1659 = vmatpush.bf16.msra.mxu3 %v3235_v27  ;;  %v3555_v12 = vor.u32 %v4111_v63, %v3552_v2  ;;  %v3408_v15 = vld [vmem:[#allocation5 + $0x5d0] sm:$0xf0]  ;;  %v4107_v16 = vld [vmem:[#allocation5 + $0x6c4] sm:$0xf]  ;;  %v3950_v22 = vld [vmem:[#allocation5 + $0x1d4] sm:$0xf0]  ;;  %v2871_v58 = vor.u32 %v3942_v50, %v2870_v49 }
  0x6f   :  { %1618 = vmatpush.bf16.msra.mxu0 %v2835_v33  ;;  %v3536_v18 = vld [vmem:[#allocation5 + $0x6d0] sm:$0xf0]  ;;  %v3411_v24 = vor.u32 %v4075_v14, %v3408_v15  ;;  %v4071_v27 = vld [vmem:[#allocation5 + $0x5a4] sm:$0xf]  ;;  %v2903_v30 = vor.u32 %v3950_v22, %v2902_v21  ;;  %v3914_v33 = vld [vmem:[#allocation5 + $0xb4] sm:$0xf0] }
  0x70   :  { %1632 = vmatpush.bf16.msra.mxu1 %v2963_v34  ;;  %v3539_v25 = vor.u32 %v4107_v16, %v3536_v18  ;;  %v3392_v28 = vld [vmem:[#allocation5 + $0x5b0] sm:$0xf0]  ;;  %v4103_v29 = vld [vmem:[#allocation5 + $0x6a4] sm:$0xf]  ;;  %v2886_v34 = vld [vmem:[#allocation5 + $0x1a8] sm:$0xf]  ;;  %v2759_v39 = vor.u32 %v3914_v33, %v2758_v32 }
  0x71   :  { %v3520_v31 = vld [vmem:[#allocation5 + $0x6b0] sm:$0xf0]  ;;  %v3395_v36 = vor.u32 %v4071_v27, %v3392_v28  ;;  %v4099_v44 = vld [vmem:[#allocation5 + $0x684] sm:$0xf]  ;;  %v2726_v60 = vld [vmem:[#allocation5 + $0x68] sm:$0xf] }
  0x72   :  { %1646 = vmatpush.bf16.msra.mxu2 %v3091_v35  ;;  %1660 = vmatpush.bf16.msra.mxu3 %v3219_v40  ;;  %v3946_v35 = vld [vmem:[#allocation5 + $0x1b4] sm:$0xf0]  ;;  %v3523_v38 = vor.u32 %v4103_v29, %v3520_v31  ;;  %v4067_v40 = vld [vmem:[#allocation5 + $0x584] sm:$0xf]  ;;  %v3376_v43 = vld [vmem:[#allocation5 + $0x590] sm:$0xf0] }
  0x73   :  { %1619 = vmatpush.bf16.msra.mxu0 %v2819_v48  ;;  %v2887_v45 = vor.u32 %v3946_v35, %v2886_v34  ;;  %v3504_v46 = vld [vmem:[#allocation5 + $0x690] sm:$0xf0]  ;;  %v3910_v48 = vld [vmem:[#allocation5 + $0x94] sm:$0xf0]  ;;  %v4063_v54 = vld [vmem:[#allocation5 + $0x564] sm:$0xf] }
  0x74   :  { %1633 = vmatpush.bf16.msra.mxu1 %v2947_v51  ;;  %v3379_v51 = vor.u32 %v4067_v40, %v3376_v43  ;;  %v2743_v53 = vor.u32 %v3910_v48, %v2742_v47  ;;  %v3360_v55 = vld [vmem:[#allocation5 + $0x570] sm:$0xf0]  ;;  %v3906_v61 = vld [vmem:[#allocation5 + $0x74] sm:$0xf0]  ;;  %v2854_v62 = vld [vmem:[#allocation5 + $0x168] sm:$0xf] }
  0x75   :  { %v3488_v59 = vld [vmem:[#allocation5 + $0x670] sm:$0xf0]  ;;  %v3938_v63 = vld [vmem:[#allocation5 + $0x174] sm:$0xf0]  ;;  %v2727_v3 = vor.u32 %v3906_v61, %v2726_v60  ;;  %v4059_v4 = vld [vmem:[#allocation5 + $0x544] sm:$0xf] }
  0x76   :  { %1647 = vmatpush.bf16.msra.mxu2 %v3075_v52  ;;  %1661 = vmatpush.bf16.msra.mxu3 %v3203_v56  ;;  %v3507_v52 = vor.u32 %v4099_v44, %v3504_v46  ;;  %v4095_v56 = vld [vmem:[#allocation5 + $0x664] sm:$0xf]  ;;  %v2855_v7 = vor.u32 %v3938_v63, %v2854_v62  ;;  %v3472_v8 = vld [vmem:[#allocation5 + $0x650] sm:$0xf0]  ;;  %v2694_v22 = vld [vmem:[#allocation5 + $0x28] sm:$0xf] }
  0x77   :  { %1620 = vmatpush.bf16.msra.mxu0 %v2803_v1  ;;  %v3363_v1 = vor.u32 %v4063_v54, %v3360_v55  ;;  %v3491_v2 = vor.u32 %v4095_v56, %v3488_v59  ;;  %v3328_v18 = vld [vmem:[#allocation5 + $0x530] sm:$0xf0]  ;;  %v4087_v19 = vld [vmem:[#allocation5 + $0x624] sm:$0xf]  ;;  %v2678_v34 = vld [vmem:[#allocation5 + $0x8] sm:$0xf] }
  0x78   :  { %1634 = vmatpush.bf16.msra.mxu1 %v2931_v5  ;;  %v3344_v5 = vld [vmem:[#allocation5 + $0x550] sm:$0xf0]  ;;  %v4051_v28 = vld [vmem:[#allocation5 + $0x504] sm:$0xf]  ;;  %v3046_v40 = vld [vmem:[#allocation5 + $0x2e8] sm:$0xf] }
  0x79   :  { %v3347_v14 = vor.u32 %v4059_v4, %v3344_v5  ;;  %v3456_v21 = vld [vmem:[#allocation5 + $0x630] sm:$0xf0]  ;;  %v4083_v32 = vld [vmem:[#allocation5 + $0x604] sm:$0xf]  ;;  %v3986_v43 = vld [vmem:[#allocation5 + $0x2f4] sm:$0xf0] }
  0x7a   :  { %1648 = vmatpush.bf16.msra.mxu2 %v3059_v6  ;;  %1662 = vmatpush.bf16.msra.mxu3 %v3187_v9  ;;  %v4091_v6 = vld [vmem:[#allocation5 + $0x644] sm:$0xf]  ;;  %v2710_v9 = vld [vmem:[#allocation5 + $0x48] sm:$0xf]  ;;  %v3312_v29 = vld [vmem:[#allocation5 + $0x510] sm:$0xf0]  ;;  %v3047_v54 = vor.u32 %v3986_v43, %v3046_v40 }
  0x7b   :  { %1669 = vmatpush.bf16.msrb.mxu0 %v3427_v10  ;;  %1635 = vmatmul.bf16.vlgmr.msra.gmra.mxu1 %v4444_v0  ;;  %v3902_v10 = vld [vmem:[#allocation5 + $0x54] sm:$0xf0]  ;;  %v3475_v15 = vor.u32 %v4091_v6, %v3472_v8  ;;  %v3440_v33 = vld [vmem:[#allocation5 + $0x610] sm:$0xf0]  ;;  %v3174_v44 = vld [vmem:[#allocation5 + $0x3e8] sm:$0xf] }
  0x7c   :  { %1683 = vmatpush.bf16.msrb.mxu1 %v3555_v12  ;;  %1621 = vmatmul.bf16.vlgmr.msra.gmra.mxu0 %v4448_v11  ;;  %v2838_v12 = vld [vmem:[#allocation5 + $0x148] sm:$0xf]  ;;  %v2711_v16 = vor.u32 %v3902_v10, %v2710_v9  ;;  %v4018_v46 = vld [vmem:[#allocation5 + $0x3f4] sm:$0xf0]  ;;  %v3443_v49 = vor.u32 %v4083_v32, %v3440_v33 }
  0x7d   :  { %1649 = vmatmul.bf16.vlgmr.msra.gmra.mxu2 %v4451_v23  ;;  %1663 = vmatmul.bf16.vlgmr.msra.gmra.mxu3 %v4454_v37  ;;  %v3302_v47 = vld [vmem:[#allocation5 + $0x4e8] sm:$0xf]  ;;  %v4050_v48 = vld [vmem:[#allocation5 + $0x4f4] sm:$0xf0]  ;;  %v3175_v55 = vor.u32 %v4018_v46, %v3174_v44 }
  0x7e   :  { %1697 = vmatpush.bf16.msrb.mxu2 %v2791_v13  ;;  %1711 = vmatpush.bf16.msrb.mxu3 %v2919_v17  ;;  %v3934_v13 = vld [vmem:[#allocation5 + $0x154] sm:$0xf0]  ;;  %v4055_v17 = vld [vmem:[#allocation5 + $0x524] sm:$0xf]  ;;  %v3303_v56 = vor.u32 %v4050_v48, %v3302_v47  ;;  %v3158_v60 = vld [vmem:[#allocation5 + $0x3c8] sm:$0xf] }
  0x7f   :  { %1670 = vmatpush.bf16.msrb.mxu0 %v3411_v24  ;;  %v2839_v20 = vor.u32 %v3934_v13, %v2838_v12  ;;  %v3898_v24 = vld [vmem:[#allocation5 + $0x34] sm:$0xf0]  ;;  %v3331_v27 = vor.u32 %v4055_v17, %v3328_v18  ;;  %v3286_v63 = vld [vmem:[#allocation5 + $0x4c8] sm:$0xf] }
  0x80   :  { %1684 = vmatpush.bf16.msrb.mxu1 %v3539_v25  ;;  %v2822_v25 = vld [vmem:[#allocation5 + $0x128] sm:$0xf]  ;;  %v2695_v31 = vor.u32 %v3898_v24, %v2694_v22  ;;  %v3982_v59 = vld [vmem:[#allocation5 + $0x2d4] sm:$0xf0] }
  0x81   :  { %v4014_v62 = vld [vmem:[#allocation5 + $0x3d4] sm:$0xf0]  ;;  %v3142_v9 = vld [vmem:[#allocation5 + $0x3a8] sm:$0xf] }
  0x82   :  { %1698 = vmatpush.bf16.msrb.mxu2 %v2775_v26  ;;  %1712 = vmatpush.bf16.msrb.mxu3 %v2903_v30  ;;  %v3930_v26 = vld [vmem:[#allocation5 + $0x134] sm:$0xf0]  ;;  %v3459_v30 = vor.u32 %v4087_v19, %v3456_v21  ;;  %v3159_v5 = vor.u32 %v4014_v62, %v3158_v60  ;;  %v3270_v13 = vld [vmem:[#allocation5 + $0x4a8] sm:$0xf] }
  0x83   :  { %1671 = vmatpush.bf16.msrb.mxu0 %v3395_v36  ;;  %v2823_v35 = vor.u32 %v3930_v26, %v2822_v25  ;;  %v3894_v36 = vld [vmem:[#allocation5 + $0x14] sm:$0xf0]  ;;  %v3126_v22 = vld [vmem:[#allocation5 + $0x388] sm:$0xf] }
  0x84   :  { %1685 = vmatpush.bf16.msrb.mxu1 %v3523_v38  ;;  %v2806_v38 = vld [vmem:[#allocation5 + $0x108] sm:$0xf]  ;;  %v2679_v50 = vor.u32 %v3894_v36, %v2678_v34  ;;  %v3978_v8 = vld [vmem:[#allocation5 + $0x2b4] sm:$0xf0] }
  0x85   :  { %v4010_v12 = vld [vmem:[#allocation5 + $0x3b4] sm:$0xf0]  ;;  %v3254_v26 = vld [vmem:[#allocation5 + $0x488] sm:$0xf] }
  0x86   :  { %1699 = vmatpush.bf16.msrb.mxu2 %v2759_v39  ;;  %1713 = vmatpush.bf16.msrb.mxu3 %v2887_v45  ;;  %v3926_v39 = vld [vmem:[#allocation5 + $0x114] sm:$0xf0]  ;;  %v3315_v45 = vor.u32 %v4051_v28, %v3312_v29  ;;  %v3143_v18 = vor.u32 %v4010_v12, %v3142_v9  ;;  %v3382_v28 = vld [vmem:[#allocation5 + $0x588] sm:$0xf] }
  0x87   :  { %1672 = vmatpush.bf16.msrb.mxu0 %v3379_v51  ;;  %v3430_v51 = vld [vmem:[#allocation5 + $0x5e8] sm:$0xf]  ;;  %v3974_v21 = vld [vmem:[#allocation5 + $0x294] sm:$0xf0] }
  0x88   :  { %1686 = vmatpush.bf16.msrb.mxu1 %v3507_v52  ;;  %v4082_v52 = vld [vmem:[#allocation5 + $0x5f4] sm:$0xf0]  ;;  %v2982_v33 = vld [vmem:[#allocation5 + $0x268] sm:$0xf] }
  0x89   :  { %v3431_v61 = vor.u32 %v4082_v52, %v3430_v51  ;;  %v4006_v25 = vld [vmem:[#allocation5 + $0x394] sm:$0xf0]  ;;  %v3366_v43 = vld [vmem:[#allocation5 + $0x568] sm:$0xf] }
  0x8a   :  { %1700 = vmatpush.bf16.msrb.mxu2 %v2743_v53  ;;  %1714 = vmatpush.bf16.msrb.mxu3 %v2871_v58  ;;  %v2807_v53 = vor.u32 %v3926_v39, %v2806_v38  ;;  %v3030_v58 = vld [vmem:[#allocation5 + $0x2c8] sm:$0xf]  ;;  %v4070_v29 = vld [vmem:[#allocation5 + $0x594] sm:$0xf0] }
  0x8b   :  { %1673 = vmatpush.bf16.msrb.mxu0 %v3363_v1  ;;  %v4046_v1 = vld [vmem:[#allocation5 + $0x4d4] sm:$0xf0]  ;;  %v3031_v4 = vor.u32 %v3982_v59, %v3030_v58  ;;  %v3383_v36 = vor.u32 %v4070_v29, %v3382_v28  ;;  %v3238_v39 = vld [vmem:[#allocation5 + $0x468] sm:$0xf] }
  0x8c   :  { %1687 = vmatpush.bf16.msrb.mxu1 %v3491_v2  ;;  %v3414_v2 = vld [vmem:[#allocation5 + $0x5c8] sm:$0xf]  ;;  %v3287_v6 = vor.u32 %v4046_v1, %v3286_v63  ;;  %v3970_v34 = vld [vmem:[#allocation5 + $0x274] sm:$0xf0] }
  0x8d   :  { %v4002_v38 = vld [vmem:[#allocation5 + $0x374] sm:$0xf0]  ;;  %v2966_v48 = vld [vmem:[#allocation5 + $0x248] sm:$0xf] }
  0x8e   :  { %1701 = vmatpush.bf16.msrb.mxu2 %v2727_v3  ;;  %1715 = vmatpush.bf16.msrb.mxu3 %v2855_v7  ;;  %v4078_v3 = vld [vmem:[#allocation5 + $0x5d4] sm:$0xf0]  ;;  %v3014_v7 = vld [vmem:[#allocation5 + $0x2a8] sm:$0xf] }
  0x8f   :  { %1674 = vmatpush.bf16.msrb.mxu0 %v3347_v14  ;;  %v3415_v10 = vor.u32 %v4078_v3, %v3414_v2  ;;  %v4042_v14 = vld [vmem:[#allocation5 + $0x4b4] sm:$0xf0]  ;;  %v3015_v17 = vor.u32 %v3978_v8, %v3014_v7  ;;  %v3078_v63 = vld [vmem:[#allocation5 + $0x328] sm:$0xf] }
  0x90   :  { %1688 = vmatpush.bf16.msrb.mxu1 %v3475_v15  ;;  %v3398_v15 = vld [vmem:[#allocation5 + $0x5a8] sm:$0xf]  ;;  %v3271_v19 = vor.u32 %v4042_v14, %v3270_v13  ;;  %v4034_v40 = vld [vmem:[#allocation5 + $0x474] sm:$0xf0] }
  0x91   :  { %v4066_v44 = vld [vmem:[#allocation5 + $0x574] sm:$0xf0]  ;;  %v3239_v47 = vor.u32 %v4034_v40, %v3238_v39  ;;  %v3206_v3 = vld [vmem:[#allocation5 + $0x428] sm:$0xf]  ;;  %v3916_v39 = vld [vmem:[#allocation5 + $0xcc] sm:$0xf] }
  0x92   :  { %1702 = vmatpush.bf16.msrb.mxu2 %v2711_v16  ;;  %1716 = vmatpush.bf16.msrb.mxu3 %v2839_v20  ;;  %v4074_v16 = vld [vmem:[#allocation5 + $0x5b4] sm:$0xf0]  ;;  %v2998_v20 = vld [vmem:[#allocation5 + $0x288] sm:$0xf]  ;;  %v3367_v51 = vor.u32 %v4066_v44, %v3366_v43  ;;  %v2776_v43 = vld [vmem:[#allocation5 + $0xd8] sm:$0xf0] }
  0x93   :  { %1675 = vmatpush.bf16.msrb.mxu0 %v3331_v27  ;;  %v3399_v24 = vor.u32 %v4074_v16, %v3398_v15  ;;  %v4038_v27 = vld [vmem:[#allocation5 + $0x494] sm:$0xf0]  ;;  %v2934_v8 = vld [vmem:[#allocation5 + $0x208] sm:$0xf]  ;;  %v3948_v44 = vld [vmem:[#allocation5 + $0x1cc] sm:$0xf] }
  0x94   :  { %1689 = vmatpush.bf16.msrb.mxu1 %v3459_v30  ;;  %v2999_v30 = vor.u32 %v3974_v21, %v2998_v20  ;;  %v3255_v32 = vor.u32 %v4038_v27, %v3254_v26  ;;  %v3998_v52 = vld [vmem:[#allocation5 + $0x354] sm:$0xf0]  ;;  %v3062_v13 = vld [vmem:[#allocation5 + $0x308] sm:$0xf]  ;;  %v3952_v26 = vld [vmem:[#allocation5 + $0x1ec] sm:$0xf] }
  0x95   :  { %v3962_v62 = vld [vmem:[#allocation5 + $0x234] sm:$0xf0]  ;;  %v3190_v15 = vld [vmem:[#allocation5 + $0x408] sm:$0xf]  ;;  %v2920_v27 = vld [vmem:[#allocation5 + $0x1f8] sm:$0xf0] }
  0x96   :  { %1703 = vmatpush.bf16.msrb.mxu2 %v2695_v31  ;;  %1717 = vmatpush.bf16.msrb.mxu3 %v2823_v35  ;;  %v3127_v31 = vor.u32 %v4006_v25, %v3126_v22  ;;  %v3110_v35 = vld [vmem:[#allocation5 + $0x368] sm:$0xf]  ;;  %v3994_v2 = vld [vmem:[#allocation5 + $0x334] sm:$0xf0]  ;;  %v3920_v22 = vld [vmem:[#allocation5 + $0xec] sm:$0xf] }
  0x97   :  { %1676 = vmatpush.bf16.msrb.mxu0 %v3315_v45  ;;  %v2983_v45 = vor.u32 %v3970_v34, %v2982_v33  ;;  %v3111_v46 = vor.u32 %v4002_v38, %v3110_v35  ;;  %v3958_v9 = vld [vmem:[#allocation5 + $0x214] sm:$0xf0]  ;;  %v3558_v20 = vld [vmem:[#allocation5 + $0x6e8] sm:$0xf]  ;;  %v2792_v25 = vld [vmem:[#allocation5 + $0xf8] sm:$0xf0]  ;;  %v2923_v35 = vor.u32 %v3952_v26, %v2920_v27 }
  0x98   :  { %1690 = vmatpush.bf16.msrb.mxu1 %v3443_v49  ;;  %v3966_v49 = vld [vmem:[#allocation5 + $0x254] sm:$0xf0]  ;;  %v2795_v34 = vor.u32 %v3920_v22, %v2792_v25  ;;  %v2984_v22 = vld [vmem:[#allocation5 + $0x278] sm:$0xf0]  ;;  %v3478_v27 = vld [vmem:[#allocation5 + $0x648] sm:$0xf] }
  0x99   :  { %v2967_v58 = vor.u32 %v3966_v49, %v2966_v48  ;;  %v3990_v14 = vld [vmem:[#allocation5 + $0x314] sm:$0xf0]  ;;  %v2779_v49 = vor.u32 %v3916_v39, %v2776_v43 }
  0x9a   :  { %1704 = vmatpush.bf16.msrb.mxu2 %v2679_v50  ;;  %1718 = vmatpush.bf16.msrb.mxu3 %v2807_v53  ;;  %v3094_v50 = vld [vmem:[#allocation5 + $0x348] sm:$0xf]  ;;  %v4114_v21 = vld [vmem:[#allocation5 + $0x6f4] sm:$0xf0]  ;;  %v3063_v28 = vor.u32 %v3990_v14, %v3062_v13 }
  0x9b   :  { %1725 = vmatpush.bf16.msra.mxu0 %v3047_v54  ;;  %1691 = vmatmul.bf16.vlgmr.msrb.gmra.mxu1 %v4456_v41  ;;  %v3222_v53 = vld [vmem:[#allocation5 + $0x448] sm:$0xf]  ;;  %v4030_v54 = vld [vmem:[#allocation5 + $0x454] sm:$0xf0]  ;;  %v3095_v59 = vor.u32 %v3998_v52, %v3094_v50  ;;  %v3559_v33 = vor.u32 %v4114_v21, %v3558_v20  ;;  %v2856_v20 = vld [vmem:[#allocation5 + $0x178] sm:$0xf0] }
  0x9c   :  { %1739 = vmatpush.bf16.msra.mxu1 %v3175_v55  ;;  %1677 = vmatmul.bf16.vlgmr.msrb.gmra.mxu0 %v4458_v42  ;;  %v3350_v55 = vld [vmem:[#allocation5 + $0x548] sm:$0xf]  ;;  %v3223_v60 = vor.u32 %v4030_v54, %v3222_v53  ;;  %v4110_v38 = vld [vmem:[#allocation5 + $0x6d4] sm:$0xf0]  ;;  %v3912_v53 = vld [vmem:[#allocation5 + $0xac] sm:$0xf] }
  0x9d   :  { %1705 = vmatmul.bf16.vlgmr.msrb.gmra.mxu2 %v4442_v57  ;;  %1719 = vmatmul.bf16.vlgmr.msrb.gmra.mxu3 %v4448_v11  ;;  %v4106_v52 = vld [vmem:[#allocation5 + $0x6b4] sm:$0xf0]  ;;  %v3494_v14 = vld [vmem:[#allocation5 + $0x668] sm:$0xf]  ;;  %v3968_v21 = vld [vmem:[#allocation5 + $0x26c] sm:$0xf] }
  0x9e   :  { %1753 = vmatpush.bf16.msra.mxu2 %v3303_v56  ;;  %1767 = vmatpush.bf16.msra.mxu3 %v3431_v61  ;;  %v4062_v56 = vld [vmem:[#allocation5 + $0x554] sm:$0xf0]  ;;  %v2950_v61 = vld [vmem:[#allocation5 + $0x228] sm:$0xf] }
  0x9f   :  { %1726 = vmatpush.bf16.msra.mxu0 %v3031_v4  ;;  %v3351_v1 = vor.u32 %v4062_v56, %v3350_v55  ;;  %v4026_v4 = vld [vmem:[#allocation5 + $0x434] sm:$0xf0]  ;;  %v2951_v7 = vor.u32 %v3962_v62, %v2950_v61  ;;  %v2760_v55 = vld [vmem:[#allocation5 + $0xb8] sm:$0xf0]  ;;  %v3944_v56 = vld [vmem:[#allocation5 + $0x1ac] sm:$0xf] }
  0xa0   :  { %1740 = vmatpush.bf16.msra.mxu1 %v3159_v5  ;;  %v3334_v5 = vld [vmem:[#allocation5 + $0x528] sm:$0xf]  ;;  %v3207_v12 = vor.u32 %v4026_v4, %v3206_v3  ;;  %v2763_v62 = vor.u32 %v3912_v53, %v2760_v55  ;;  %v3908_v3 = vld [vmem:[#allocation5 + $0x8c] sm:$0xf]  ;;  %v4090_v43 = vld [vmem:[#allocation5 + $0x634] sm:$0xf0] }
  0xa1   :  { %v4086_v53 = vld [vmem:[#allocation5 + $0x614] sm:$0xf0] }
  0xa2   :  { %1754 = vmatpush.bf16.msra.mxu2 %v3287_v6  ;;  %1768 = vmatpush.bf16.msra.mxu3 %v3415_v10  ;;  %v4058_v6 = vld [vmem:[#allocation5 + $0x534] sm:$0xf0]  ;;  %v3079_v10 = vor.u32 %v3994_v2, %v3078_v63 }
  0xa3   :  { %1727 = vmatpush.bf16.msra.mxu0 %v3015_v17  ;;  %v3335_v16 = vor.u32 %v4058_v6, %v3334_v5  ;;  %v4022_v17 = vld [vmem:[#allocation5 + $0x414] sm:$0xf0]  ;;  %v2744_v5 = vld [vmem:[#allocation5 + $0x98] sm:$0xf0]  ;;  %v3940_v6 = vld [vmem:[#allocation5 + $0x18c] sm:$0xf] }
  0xa4   :  { %1741 = vmatpush.bf16.msra.mxu1 %v3143_v18  ;;  %v3318_v18 = vld [vmem:[#allocation5 + $0x508] sm:$0xf]  ;;  %v3191_v29 = vor.u32 %v4022_v17, %v3190_v15  ;;  %v4102_v2 = vld [vmem:[#allocation5 + $0x694] sm:$0xf0] }
  0xa5   :  { %v4098_v15 = vld [vmem:[#allocation5 + $0x674] sm:$0xf0] }
  0xa6   :  { %1755 = vmatpush.bf16.msra.mxu2 %v3271_v19  ;;  %1769 = vmatpush.bf16.msra.mxu3 %v3399_v24  ;;  %v4054_v19 = vld [vmem:[#allocation5 + $0x514] sm:$0xf0]  ;;  %v2935_v24 = vor.u32 %v3958_v9, %v2934_v8  ;;  %v3972_v8 = vld [vmem:[#allocation5 + $0x28c] sm:$0xf]  ;;  %v3000_v9 = vld [vmem:[#allocation5 + $0x298] sm:$0xf0] }
  0xa7   :  { %1728 = vmatpush.bf16.msra.mxu0 %v2999_v30  ;;  %v3984_v30 = vld [vmem:[#allocation5 + $0x2ec] sm:$0xf]  ;;  %v3003_v17 = vor.u32 %v3972_v8, %v3000_v9 }
  0xa8   :  { %1742 = vmatpush.bf16.msra.mxu1 %v3127_v31  ;;  %v3048_v31 = vld [vmem:[#allocation5 + $0x2f8] sm:$0xf0] }
  0xa9   :  { %v3051_v40 = vor.u32 %v3984_v30, %v3048_v31  ;;  %v2987_v30 = vor.u32 %v3968_v21, %v2984_v22  ;;  %v2712_v31 = vld [vmem:[#allocation5 + $0x58] sm:$0xf0]  ;;  %v4076_v22 = vld [vmem:[#allocation5 + $0x5cc] sm:$0xf] }
  0xaa   :  { %1756 = vmatpush.bf16.msra.mxu2 %v3255_v32  ;;  %1770 = vmatpush.bf16.msra.mxu3 %v3383_v36  ;;  %v3319_v32 = vor.u32 %v4054_v19, %v3318_v18  ;;  %v3542_v36 = vld [vmem:[#allocation5 + $0x6c8] sm:$0xf]  ;;  %v2728_v18 = vld [vmem:[#allocation5 + $0x78] sm:$0xf0]  ;;  %v3936_v19 = vld [vmem:[#allocation5 + $0x16c] sm:$0xf] }
  0xab   :  { %1729 = vmatpush.bf16.msra.mxu0 %v2983_v45  ;;  %v2904_v45 = vld [vmem:[#allocation5 + $0x1d8] sm:$0xf0]  ;;  %v3543_v48 = vor.u32 %v4110_v38, %v3542_v36  ;;  %v2859_v26 = vor.u32 %v3936_v19, %v2856_v20  ;;  %v4044_v19 = vld [vmem:[#allocation5 + $0x4cc] sm:$0xf] }
  0xac   :  { %1743 = vmatpush.bf16.msra.mxu1 %v3111_v46  ;;  %v3980_v46 = vld [vmem:[#allocation5 + $0x2cc] sm:$0xf]  ;;  %v2907_v50 = vor.u32 %v3948_v44, %v2904_v45  ;;  %v3288_v21 = vld [vmem:[#allocation5 + $0x4d8] sm:$0xf0] }
  0xad   :  { %v3896_v44 = vld [vmem:[#allocation5 + $0x2c] sm:$0xf] }
  0xae   :  { %1757 = vmatpush.bf16.msra.mxu2 %v3239_v47  ;;  %1771 = vmatpush.bf16.msra.mxu3 %v3367_v51  ;;  %v3032_v47 = vld [vmem:[#allocation5 + $0x2d8] sm:$0xf0]  ;;  %v3526_v51 = vld [vmem:[#allocation5 + $0x6a8] sm:$0xf] }
  0xaf   :  { %1730 = vmatpush.bf16.msra.mxu0 %v2967_v58  ;;  %v3035_v54 = vor.u32 %v3980_v46, %v3032_v47  ;;  %v2888_v58 = vld [vmem:[#allocation5 + $0x1b8] sm:$0xf0]  ;;  %v3527_v61 = vor.u32 %v4106_v52, %v3526_v51  ;;  %v3928_v47 = vld [vmem:[#allocation5 + $0x12c] sm:$0xf]  ;;  %v3446_v52 = vld [vmem:[#allocation5 + $0x608] sm:$0xf] }
  0xb0   :  { %1744 = vmatpush.bf16.msra.mxu1 %v3095_v59  ;;  %v3976_v59 = vld [vmem:[#allocation5 + $0x2ac] sm:$0xf]  ;;  %v2891_v63 = vor.u32 %v3944_v56, %v2888_v58  ;;  %v2696_v46 = vld [vmem:[#allocation5 + $0x38] sm:$0xf0] }
  0xb1   :  { %v3892_v56 = vld [vmem:[#allocation5 + $0xc] sm:$0xf]  ;;  %v2680_v58 = vld [vmem:[#allocation5 + $0x18] sm:$0xf0] }
  0xb2   :  { %1758 = vmatpush.bf16.msra.mxu2 %v3223_v60  ;;  %1772 = vmatpush.bf16.msra.mxu3 %v3351_v1  ;;  %v3016_v60 = vld [vmem:[#allocation5 + $0x2b8] sm:$0xf0]  ;;  %v3510_v1 = vld [vmem:[#allocation5 + $0x688] sm:$0xf]  ;;  %v2683_v8 = vor.u32 %v3892_v56, %v2680_v58  ;;  %v4032_v56 = vld [vmem:[#allocation5 + $0x46c] sm:$0xf] }
  0xb3   :  { %1731 = vmatpush.bf16.msra.mxu0 %v2951_v7  ;;  %v3019_v4 = vor.u32 %v3976_v59, %v3016_v60  ;;  %v2872_v7 = vld [vmem:[#allocation5 + $0x198] sm:$0xf0]  ;;  %v3924_v59 = vld [vmem:[#allocation5 + $0x10c] sm:$0xf] }
  0xb4   :  { %1745 = vmatpush.bf16.msra.mxu1 %v3079_v10  ;;  %v3511_v10 = vor.u32 %v4102_v2, %v3510_v1  ;;  %v2875_v13 = vor.u32 %v3940_v6, %v2872_v7  ;;  %v4016_v1 = vld [vmem:[#allocation5 + $0x3ec] sm:$0xf]  ;;  %v3176_v2 = vld [vmem:[#allocation5 + $0x3f8] sm:$0xf0] }
  0xb5   :  { %v4080_v6 = vld [vmem:[#allocation5 + $0x5ec] sm:$0xf]  ;;  %v3432_v7 = vld [vmem:[#allocation5 + $0x5f8] sm:$0xf0] }
  0xb6   :  { %1759 = vmatpush.bf16.msra.mxu2 %v3207_v12  ;;  %1773 = vmatpush.bf16.msra.mxu3 %v3335_v16  ;;  %v2747_v12 = vor.u32 %v3908_v3, %v2744_v5  ;;  %v3904_v16 = vld [vmem:[#allocation5 + $0x6c] sm:$0xf]  ;;  %v3304_v5 = vld [vmem:[#allocation5 + $0x4f8] sm:$0xf0] }
  0xb7   :  { %1732 = vmatpush.bf16.msra.mxu0 %v2935_v24  ;;  %v3495_v24 = vor.u32 %v4098_v15, %v3494_v14  ;;  %v2731_v25 = vor.u32 %v3904_v16, %v2728_v18  ;;  %v4048_v3 = vld [vmem:[#allocation5 + $0x4ec] sm:$0xf]  ;;  %v3179_v14 = vor.u32 %v4016_v1, %v3176_v2  ;;  %v3435_v16 = vor.u32 %v4080_v6, %v3432_v7  ;;  %v3160_v18 = vld [vmem:[#allocation5 + $0x3d8] sm:$0xf0] }
  0xb8   :  { %1746 = vmatpush.bf16.msra.mxu1 %v3063_v28  ;;  %v4094_v28 = vld [vmem:[#allocation5 + $0x654] sm:$0xf0]  ;;  %v3307_v15 = vor.u32 %v4048_v3, %v3304_v5  ;;  %v3496_v1 = vld [vmem:[#allocation5 + $0x678] sm:$0xf0]  ;;  %v4482_v2 = vpop.f32.mrf.mxu1  ;;  %v3996_v6 = vld [vmem:[#allocation5 + $0x34c] sm:$0xf] }
  0xb9   :  { %v3479_v36 = vor.u32 %v4094_v28, %v3478_v27  ;;  %v3291_v28 = vor.u32 %v4044_v19, %v3288_v21  ;;  %v3096_v7 = vld [vmem:[#allocation5 + $0x358] sm:$0xf0]  ;;  %v3992_v19 = vld [vmem:[#allocation5 + $0x32c] sm:$0xf] }
  0xba   :  { %1760 = vmatpush.bf16.msra.mxu2 %v3191_v29  ;;  %1774 = vmatpush.bf16.msra.mxu3 %v3319_v32  ;;  %v3900_v29 = vld [vmem:[#allocation5 + $0x4c] sm:$0xf] }
  0xbb   :  { %1781 = vmatpush.bf16.msrb.mxu0 %v3559_v33  ;;  %1747 = vmatmul.bf16.vlgmr.msra.gmra.mxu1 %v4451_v23  ;;  %v3932_v32 = vld [vmem:[#allocation5 + $0x14c] sm:$0xf]  ;;  %v2840_v33 = vld [vmem:[#allocation5 + $0x158] sm:$0xf0]  ;;  %v2715_v38 = vor.u32 %v3900_v29, %v2712_v31 }
  0xbc   :  { %1795 = vmatpush.bf16.msrb.mxu1 %v2795_v34  ;;  %1733 = vmatmul.bf16.vlgmr.msra.gmra.mxu0 %v4444_v0  ;;  %v3964_v34 = vld [vmem:[#allocation5 + $0x24c] sm:$0xf]  ;;  %v2843_v39 = vor.u32 %v3932_v32, %v2840_v33  ;;  %v3144_v31 = vld [vmem:[#allocation5 + $0x3b8] sm:$0xf0] }
  0xbd   :  { %1761 = vmatmul.bf16.vlgmr.msra.gmra.mxu2 %v4454_v37  ;;  %1775 = vmatmul.bf16.vlgmr.msra.gmra.mxu3 %v4458_v42  ;;  %v4040_v32 = vld [vmem:[#allocation5 + $0x4ac] sm:$0xf] }
  0xbe   :  { %1809 = vmatpush.bf16.msrb.mxu2 %v2923_v35  ;;  %1823 = vmatpush.bf16.msrb.mxu3 %v3051_v40  ;;  %v2968_v35 = vld [vmem:[#allocation5 + $0x258] sm:$0xf0]  ;;  %v3462_v40 = vld [vmem:[#allocation5 + $0x628] sm:$0xf]  ;;  %v4024_v21 = vld [vmem:[#allocation5 + $0x42c] sm:$0xf] }
  0xbf   :  { %1782 = vmatpush.bf16.msrb.mxu0 %v3543_v48  ;;  %v2971_v45 = vor.u32 %v3964_v34, %v2968_v35  ;;  %v2824_v48 = vld [vmem:[#allocation5 + $0x138] sm:$0xf0]  ;;  %v3463_v51 = vor.u32 %v4090_v43, %v3462_v40  ;;  %v4072_v35 = vld [vmem:[#allocation5 + $0x5ac] sm:$0xf] }
  0xc0   :  { %1796 = vmatpush.bf16.msrb.mxu1 %v2779_v49  ;;  %v3960_v49 = vld [vmem:[#allocation5 + $0x22c] sm:$0xf]  ;;  %v2827_v55 = vor.u32 %v3928_v47, %v2824_v48  ;;  %v3272_v34 = vld [vmem:[#allocation5 + $0x4b8] sm:$0xf0] }
  0xc1   :  { %v3275_v43 = vor.u32 %v4040_v32, %v3272_v34  ;;  %v4036_v47 = vld [vmem:[#allocation5 + $0x48c] sm:$0xf] }
  0xc2   :  { %1810 = vmatpush.bf16.msrb.mxu2 %v2907_v50  ;;  %1824 = vmatpush.bf16.msrb.mxu3 %v3035_v54  ;;  %v2952_v50 = vld [vmem:[#allocation5 + $0x238] sm:$0xf0]  ;;  %v2699_v54 = vor.u32 %v3896_v44, %v2696_v46  ;;  %v3988_v32 = vld [vmem:[#allocation5 + $0x30c] sm:$0xf] }
  0xc3   :  { %1783 = vmatpush.bf16.msrb.mxu0 %v3527_v61  ;;  %v2955_v60 = vor.u32 %v3960_v49, %v2952_v50  ;;  %v2808_v61 = vld [vmem:[#allocation5 + $0x118] sm:$0xf0]  ;;  %v4068_v50 = vld [vmem:[#allocation5 + $0x58c] sm:$0xf] }
  0xc4   :  { %1797 = vmatpush.bf16.msrb.mxu1 %v2763_v62  ;;  %v3956_v62 = vld [vmem:[#allocation5 + $0x20c] sm:$0xf]  ;;  %v2811_v9 = vor.u32 %v3924_v59, %v2808_v61  ;;  %v3128_v46 = vld [vmem:[#allocation5 + $0x398] sm:$0xf0] }
  0xc5   :  { %v3256_v49 = vld [vmem:[#allocation5 + $0x498] sm:$0xf0] }
  0xc6   :  { %1811 = vmatpush.bf16.msrb.mxu2 %v2891_v63  ;;  %1825 = vmatpush.bf16.msrb.mxu3 %v3019_v4  ;;  %v2936_v63 = vld [vmem:[#allocation5 + $0x218] sm:$0xf0]  ;;  %v3447_v4 = vor.u32 %v4086_v53, %v3446_v52  ;;  %v3259_v53 = vor.u32 %v4036_v47, %v3256_v49  ;;  %v3622_v49 = vld [vmem:[#allocation8 + $0x70] sm:$0xf] }
  0xc7   :  { %1784 = vmatpush.bf16.msrb.mxu0 %v3511_v10  ;;  %v4112_v10 = vld [vmem:[#allocation5 + $0x6ec] sm:$0xf]  ;;  %v3512_v52 = vld [vmem:[#allocation5 + $0x698] sm:$0xf0] }
  0xc8   :  { %1798 = vmatpush.bf16.msrb.mxu1 %v2747_v12  ;;  %v3560_v12 = vld [vmem:[#allocation5 + $0x6f8] sm:$0xf0] }
  0xc9   :  { %v3563_v20 = vor.u32 %v4112_v10, %v3560_v12  ;;  %v3240_v59 = vld [vmem:[#allocation5 + $0x478] sm:$0xf0]  ;;  %v4060_v12 = vld [vmem:[#allocation5 + $0x54c] sm:$0xf] }
  0xca   :  { %1812 = vmatpush.bf16.msrb.mxu2 %v2875_v13  ;;  %1826 = vmatpush.bf16.msrb.mxu3 %v3003_v17  ;;  %v2939_v13 = vor.u32 %v3956_v62, %v2936_v63  ;;  %v4012_v17 = vld [vmem:[#allocation5 + $0x3cc] sm:$0xf]  ;;  %v3368_v61 = vld [vmem:[#allocation5 + $0x578] sm:$0xf0]  ;;  %v4480_v62 = vpop.f32.mrf.mxu0 }
  0xcb   :  { %1785 = vmatpush.bf16.msrb.mxu0 %v3495_v24  ;;  %v3416_v24 = vld [vmem:[#allocation5 + $0x5d8] sm:$0xf0]  ;;  %v3163_v27 = vor.u32 %v4012_v17, %v3160_v18  ;;  %v4096_v63 = vld [vmem:[#allocation5 + $0x66c] sm:$0xf]  ;;  %v4488_v47 = vpop.f32.mrf.mxu3 }
  0xcc   :  { %1799 = vmatpush.bf16.msrb.mxu1 %v2731_v25  ;;  %v4108_v25 = vld [vmem:[#allocation5 + $0x6cc] sm:$0xf]  ;;  %v3419_v29 = vor.u32 %v4076_v22, %v3416_v24  ;;  %v3224_v10 = vld [vmem:[#allocation5 + $0x458] sm:$0xf0]  ;;  %v4484_v22 = vpop.f32.mrf.mxu2 }
  0xce   :  { %1813 = vmatpush.bf16.msrb.mxu2 %v2859_v26  ;;  %1827 = vmatpush.bf16.msrb.mxu3 %v2987_v30  ;;  %v3544_v26 = vld [vmem:[#allocation5 + $0x6d8] sm:$0xf0]  ;;  %v4008_v30 = vld [vmem:[#allocation5 + $0x3ac] sm:$0xf] }
  0xcf   :  { %1786 = vmatpush.bf16.msrb.mxu0 %v3479_v36  ;;  %v3547_v33 = vor.u32 %v4108_v25, %v3544_v26  ;;  %v3400_v36 = vld [vmem:[#allocation5 + $0x5b8] sm:$0xf0]  ;;  %v3147_v40 = vor.u32 %v4008_v30, %v3144_v31  ;;  %v4056_v26 = vld [vmem:[#allocation5 + $0x52c] sm:$0xf]  ;;  %v4486_v30 = vld [vmem:[#allocation7] sm:$0xf] }
  0xd0   :  { %1800 = vmatpush.bf16.msrb.mxu1 %v2715_v38  ;;  %v4104_v38 = vld [vmem:[#allocation5 + $0x6ac] sm:$0xf]  ;;  %v3403_v44 = vor.u32 %v4072_v35, %v3400_v36  ;;  %v3208_v25 = vld [vmem:[#allocation5 + $0x438] sm:$0xf0] }
  0xd1   :  { %v3211_v34 = vor.u32 %v4024_v21, %v3208_v25  ;;  %v3064_v36 = vld [vmem:[#allocation5 + $0x318] sm:$0xf0] }
  0xd2   :  { %1814 = vmatpush.bf16.msrb.mxu2 %v2843_v39  ;;  %1828 = vmatpush.bf16.msrb.mxu3 %v2971_v45  ;;  %v3528_v39 = vld [vmem:[#allocation5 + $0x6b8] sm:$0xf0]  ;;  %v4004_v45 = vld [vmem:[#allocation5 + $0x38c] sm:$0xf] }
  0xd3   :  { %1787 = vmatpush.bf16.msrb.mxu0 %v3463_v51  ;;  %v3531_v48 = vor.u32 %v4104_v38, %v3528_v39  ;;  %v4100_v51 = vld [vmem:[#allocation5 + $0x68c] sm:$0xf]  ;;  %v3192_v39 = vld [vmem:[#allocation5 + $0x418] sm:$0xf0] }
  0xd4   :  { %1801 = vmatpush.bf16.msrb.mxu1 %v2699_v54  ;;  %v4000_v54 = vld [vmem:[#allocation5 + $0x36c] sm:$0xf]  ;;  %v3515_v58 = vor.u32 %v4100_v51, %v3512_v52  ;;  %v3686_v51 = vld [vmem:[#allocation8 + $0xf0] sm:$0xf]  ;;  %v4146_v52 = vld [vmem:[#allocation8 + $0xf4] sm:$0xf0] }
  0xd5   :  { %v4020_v38 = vld [vmem:[#allocation5 + $0x40c] sm:$0xf] }
  0xd6   :  { %1815 = vmatpush.bf16.msrb.mxu2 %v2827_v55  ;;  %1829 = vmatpush.bf16.msrb.mxu3 %v2955_v60  ;;  %v3112_v55 = vld [vmem:[#allocation5 + $0x378] sm:$0xf0]  ;;  %v4064_v60 = vld [vmem:[#allocation5 + $0x56c] sm:$0xf] }
  0xd7   :  { %1788 = vmatpush.bf16.msrb.mxu0 %v3447_v4  ;;  %v3115_v3 = vor.u32 %v4000_v54, %v3112_v55  ;;  %v3243_v4 = vor.u32 %v4032_v56, %v3240_v59  ;;  %v3371_v5 = vor.u32 %v4064_v60, %v3368_v61  ;;  %v3614_v56 = vld [vmem:[#allocation8 + $0x60] sm:$0xf]  ;;  %v3687_v59 = vor.u32 %v4146_v52, %v3686_v51  ;;  %v1540_v60 = vpop.f32.mrf.mxu2 }
  0xd8   :  { %1802 = vmatpush.bf16.msrb.mxu1 %v2683_v8  ;;  %v4028_v8 = vld [vmem:[#allocation5 + $0x44c] sm:$0xf]  ;;  %v3678_v61 = vld [vmem:[#allocation8 + $0xe0] sm:$0xf]  ;;  %v338_v52 = vperm.slane %v4486_v30, 1 }
  0xd9   :  { %v3227_v17 = vor.u32 %v4028_v8, %v3224_v10  ;;  %v3670_v10 = vld [vmem:[#allocation8 + $0xd0] sm:$0xf] }
  0xda   :  { %1816 = vmatpush.bf16.msrb.mxu2 %v2811_v9  ;;  %1830 = vmatpush.bf16.msrb.mxu3 %v2939_v13  ;;  %v3499_v9 = vor.u32 %v4096_v63, %v3496_v1  ;;  %v3352_v13 = vld [vmem:[#allocation5 + $0x558] sm:$0xf0]  ;;  %v4144_v63 = vld [vmem:[#allocation8 + $0xe4] sm:$0xf0] }
  0xdb   :  { %1837 = vmatpush.bf16.msra.mxu0 %v3179_v14  ;;  %1803 = vmatmul.bf16.vlgmr.msrb.gmra.mxu1 %v4442_v57  ;;  %v4092_v14 = vld [vmem:[#allocation5 + $0x64c] sm:$0xf]  ;;  %v3355_v18 = vor.u32 %v4060_v12, %v3352_v13  ;;  %v3679_v8 = vor.u32 %v4144_v63, %v3678_v61  ;;  %v3630_v61 = vld [vmem:[#allocation8 + $0x80] sm:$0xf] }
  0xdc   :  { %1851 = vmatpush.bf16.msra.mxu1 %v3307_v15  ;;  %1789 = vmatmul.bf16.vlgmr.msrb.gmra.mxu0 %v4456_v41  ;;  %v3480_v15 = vld [vmem:[#allocation5 + $0x658] sm:$0xf0]  ;;  %v4132_v63 = vld [vmem:[#allocation8 + $0x84] sm:$0xf0] }
  0xdd   :  { %1817 = vmatmul.bf16.vlgmr.msrb.gmra.mxu2 %v4448_v11  ;;  %1831 = vmatmul.bf16.vlgmr.msrb.gmra.mxu3 %v4444_v0  ;;  %v3384_v11 = vld [vmem:[#allocation5 + $0x598] sm:$0xf0]  ;;  %v3131_v0 = vor.u32 %v4004_v45, %v3128_v46  ;;  %v3483_v24 = vor.u32 %v4092_v14, %v3480_v15  ;;  %v4084_v46 = vld [vmem:[#allocation5 + $0x60c] sm:$0xf]  ;;  %v1554_v14 = vpop.f32.mrf.mxu3 }
  0xde   :  { %1865 = vmatpush.bf16.msra.mxu2 %v3435_v16  ;;  %1879 = vmatpush.bf16.msra.mxu3 %v3563_v20  ;;  %v3387_v57 = vor.u32 %v4068_v50, %v3384_v11  ;;  %v3099_v16 = vor.u32 %v3996_v6, %v3096_v7  ;;  %v3080_v20 = vld [vmem:[#allocation5 + $0x338] sm:$0xf0]  ;;  %v3067_v11 = vor.u32 %v3988_v32, %v3064_v36  ;;  %v3606_v6 = vld [vmem:[#allocation8 + $0x50] sm:$0xf]  ;;  %v3646_v36 = vld [vmem:[#allocation8 + $0xa0] sm:$0xf] }
  0xdf   :  { %1838 = vmatpush.bf16.msra.mxu0 %v3163_v27  ;;  %v3336_v27 = vld [vmem:[#allocation5 + $0x538] sm:$0xf0]  ;;  %v3083_v31 = vor.u32 %v3992_v19, %v3080_v20  ;;  %v4140_v19 = vld [vmem:[#allocation8 + $0xc4] sm:$0xf0] }
  0xe0   :  { %1852 = vmatpush.bf16.msra.mxu1 %v3291_v28  ;;  %v4088_v28 = vld [vmem:[#allocation5 + $0x62c] sm:$0xf]  ;;  %v3339_v35 = vor.u32 %v4056_v26, %v3336_v27  ;;  %v3320_v45 = vld [vmem:[#allocation5 + $0x518] sm:$0xf0]  ;;  %v3654_v26 = vld [vmem:[#allocation8 + $0xb0] sm:$0xf] }
  0xe1   :  { %v4130_v50 = vld [vmem:[#allocation8 + $0x74] sm:$0xf0] }
  0xe2   :  { %1866 = vmatpush.bf16.msra.mxu2 %v3419_v29  ;;  %1880 = vmatpush.bf16.msra.mxu3 %v3547_v33  ;;  %v3464_v29 = vld [vmem:[#allocation5 + $0x638] sm:$0xf0]  ;;  %v1512_v33 = vpop.f32.mrf.mxu0  ;;  %v3623_v55 = vor.u32 %v4130_v50, %v3622_v49 }
  0xe3   :  { %1839 = vmatpush.bf16.msra.mxu0 %v3147_v40  ;;  %v1526_v40 = vpop.f32.mrf.mxu1  ;;  %v4126_v7 = vld [vmem:[#allocation8 + $0x54] sm:$0xf0] }
  0xe4   :  { %1853 = vmatpush.bf16.msra.mxu1 %v3275_v43  ;;  %v3467_v43 = vor.u32 %v4088_v28, %v3464_v29  ;;  %v3607_v15 = vor.u32 %v4126_v7, %v3606_v6  ;;  %v4134_v49 = vld [vmem:[#allocation8 + $0x94] sm:$0xf0] }
  0xe6   :  { %1867 = vmatpush.bf16.msra.mxu2 %v3403_v44  ;;  %1881 = vmatpush.bf16.msra.mxu3 %v3531_v48  ;;  %v4052_v44 = vld [vmem:[#allocation5 + $0x50c] sm:$0xf]  ;;  %v3448_v48 = vld [vmem:[#allocation5 + $0x618] sm:$0xf0] }
  0xe7   :  { %1840 = vmatpush.bf16.msra.mxu0 %v3131_v0  ;;  %v337_v0 = vperm.slane %v4486_v30, 0  ;;  %v3451_v54 = vor.u32 %v4084_v46, %v3448_v48  ;;  %v3638_v48 = vld [vmem:[#allocation8 + $0x90] sm:$0xf] }
  0xe8   :  { %1854 = vmatpush.bf16.msra.mxu1 %v3259_v53  ;;  %v3195_v53 = vor.u32 %v4020_v38, %v3192_v39  ;;  %v4136_v38 = vld [vmem:[#allocation8 + $0xa4] sm:$0xf0] }
  0xe9   :  { %v1511_v1 = vadd.f32 %v4480_v62, %v337_v0  ;;  %v4142_v62 = vld [vmem:[#allocation8 + $0xd4] sm:$0xf0]  ;;  %v3647_v46 = vor.u32 %v4136_v38, %v3646_v36 }
  0xea   :  { %1868 = vmatpush.bf16.msra.mxu2 %v3387_v57  ;;  %1882 = vmatpush.bf16.msra.mxu3 %v3515_v58  ;;  %v3323_v57 = vor.u32 %v4052_v44, %v3320_v45  ;;  %v4128_v58 = vld [vmem:[#allocation8 + $0x64] sm:$0xf0]  ;;  %v3574_v44 = vld [vmem:[#allocation8 + $0x10] sm:$0xf]  ;;  %v4118_v45 = vld [vmem:[#allocation8 + $0x14] sm:$0xf0] }
  0xeb   :  { %1841 = vmatpush.bf16.msra.mxu0 %v3115_v3  ;;  %v1513_v3 = vadd.f32 %v1512_v33, %v337_v0  ;;  %v1525_v12 = vadd.f32 %v4482_v2, %v1511_v1  ;;  %v4122_v2 = vld [vmem:[#allocation8 + $0x34] sm:$0xf0] }
  0xec   :  { %1855 = vmatpush.bf16.msra.mxu1 %v3243_v4  ;;  %v3615_v4 = vor.u32 %v4128_v58, %v3614_v56  ;;  %v4116_v56 = vld [vmem:[#allocation8 + $0x4] sm:$0xf0]  ;;  %v4129_v58 = vld [vmem:[#allocation8 + $0x74] sm:$0xf] }
  0xed   :  { %v1527_v13 = vadd.f32 %v1526_v40, %v1513_v3  ;;  %v4145_v3 = vld [vmem:[#allocation8 + $0xf4] sm:$0xf] }
  0xee   :  { %1869 = vmatpush.bf16.msra.mxu2 %v3371_v5  ;;  %1883 = vmatpush.bf16.msra.mxu3 %v3499_v9  ;;  %v1566_v5 = vpop.f32.mrf.mxu0  ;;  %v1580_v9 = vpop.f32.mrf.mxu1 }
  0xef   :  { %1842 = vmatpush.bf16.msra.mxu0 %v3099_v16  ;;  %v4124_v16 = vld [vmem:[#allocation8 + $0x44] sm:$0xf0]  ;;  %v1541_v20 = vadd.f32 %v1540_v60, %v1527_v13  ;;  %v3624_v60 = vld [vmem:[#allocation8 + $0x78] sm:$0xf0] }
  0xf0   :  { %1856 = vmatpush.bf16.msra.mxu1 %v3227_v17  ;;  %v3671_v17 = vor.u32 %v4142_v62, %v3670_v10  ;;  %v4127_v10 = vld [vmem:[#allocation8 + $0x64] sm:$0xf]  ;;  %v3616_v62 = vld [vmem:[#allocation8 + $0x68] sm:$0xf0] }
  0xf1   :  { %v1555_v28 = vadd.f32 %v1554_v14, %v1541_v20 }
  0xf2   :  { %1870 = vmatpush.bf16.msra.mxu2 %v3355_v18  ;;  %1884 = vmatpush.bf16.msra.mxu3 %v3483_v24  ;;  %v3662_v18 = vld [vmem:[#allocation8 + $0xc0] sm:$0xf]  ;;  %v3590_v24 = vld [vmem:[#allocation8 + $0x30] sm:$0xf] }
  0xf3   :  { %1843 = vmatpush.bf16.msra.mxu0 %v3083_v31  ;;  %v3663_v25 = vor.u32 %v4140_v19, %v3662_v18  ;;  %v1608_v31 = vpop.f32.mrf.mxu3  ;;  %v3591_v33 = vor.u32 %v4122_v2, %v3590_v24  ;;  %v3619_v19 = vor.u32 %v4127_v10, %v3616_v62  ;;  %v3576_v62 = vld [vmem:[#allocation8 + $0x18] sm:$0xf0] }
  0xf4   :  { %1857 = vmatpush.bf16.msra.mxu1 %v3211_v34  ;;  %v3582_v34 = vld [vmem:[#allocation8 + $0x20] sm:$0xf] }
  0xf6   :  { %1871 = vmatpush.bf16.msra.mxu2 %v3339_v35  ;;  %1885 = vmatpush.bf16.msra.mxu3 %v3467_v43  ;;  %v1568_v29 = vpop.f32.mrf.mxu0  ;;  %v1582_v32 = vpop.f32.mrf.mxu1 }
  0xf7   :  { %1844 = vmatpush.bf16.msra.mxu0 %v3067_v11  ;;  %v1569_v40 = vadd.f32 %v1568_v29, %v1555_v28  ;;  %v4123_v29 = vld [vmem:[#allocation8 + $0x44] sm:$0xf] }
  0xf8   :  { %1858 = vmatpush.bf16.msra.mxu1 %v3195_v53  ;;  %v3575_v53 = vor.u32 %v4118_v45, %v3574_v44  ;;  %v4121_v44 = vld [vmem:[#allocation8 + $0x34] sm:$0xf] }
  0xf9   :  { %v1583_v11 = vadd.f32 %v1582_v32, %v1569_v40 }
  0xfa   :  { %1872 = vmatpush.bf16.msra.mxu2 %v3323_v57  ;;  %1886 = vmatpush.bf16.msra.mxu3 %v3451_v54 }
  0xfb   :  { %2295 = vmatpush.bf16.msrb.mxu0 %v3623_v55  ;;  %1859 = vmatmul.bf16.vlgmr.msra.gmra.mxu1 %v4454_v37  ;;  %v1539_v37 = vadd.f32 %v4484_v22, %v1525_v12  ;;  %v4120_v22 = vld [vmem:[#allocation8 + $0x24] sm:$0xf0]  ;;  %v1610_v54 = vpop.f32.mrf.mxu3  ;;  %v3566_v55 = vld [vmem:[#allocation8] sm:$0xf] }
  0xfc   :  { %1845 = vmatmul.bf16.vlgmr.msra.gmra.mxu0 %v4451_v23  ;;  %2309 = vmatpush.bf16.msrb.mxu1 %v3687_v59  ;;  %v3598_v23 = vld [vmem:[#allocation8 + $0x40] sm:$0xf]  ;;  %v3583_v43 = vor.u32 %v4120_v22, %v3582_v34  ;;  %v3639_v59 = vor.u32 %v4134_v49, %v3638_v48  ;;  %v3567_v6 = vor.u32 %v4116_v56, %v3566_v55  ;;  %v3664_v34 = vld [vmem:[#allocation8 + $0xc8] sm:$0xf0]  ;;  %v3750_v22 = vld [vmem:[#allocation8 + $0x170] sm:$0xf] }
  0xfd   :  { %1873 = vmatmul.bf16.vlgmr.msra.gmra.mxu2 %v4458_v42  ;;  %1887 = vmatmul.bf16.vlgmr.msra.gmra.mxu3 %v4456_v41  ;;  %v1594_v42 = vpop.f32.mrf.mxu2  ;;  %v3599_v21 = vor.u32 %v4124_v16, %v3598_v23  ;;  %v4138_v41 = vld [vmem:[#allocation8 + $0xb4] sm:$0xf0]  ;;  %v1553_v27 = vadd.f32 %v4488_v47, %v1539_v37  ;;  %v3680_v23 = vld [vmem:[#allocation8 + $0xe8] sm:$0xf0]  ;;  %v1611_v37 = vadd.f32 %v1610_v54, %v338_v52  ;;  %v3742_v49 = vld [vmem:[#allocation8 + $0x160] sm:$0xf] }
  0xfe   :  { %v3655_v35 = vor.u32 %v4138_v41, %v3654_v26  ;;  %v1622_v51 = vpop.f32.mrf.mxu0  ;;  %v1636_v0 = vpop.f32.mrf.mxu1  ;;  %v3672_v26 = vld [vmem:[#allocation8 + $0xd8] sm:$0xf0]  ;;  %v4119_v56 = vld [vmem:[#allocation8 + $0x24] sm:$0xf] }
  0xff   :  { %2296 = vmatpush.bf16.msrb.mxu0 %v3615_v4  ;;  %v1567_v39 = vadd.f32 %v1566_v5, %v1553_v27  ;;  %v3688_v4 = vld [vmem:[#allocation8 + $0xf8] sm:$0xf0]  ;;  %v1609_v5 = vadd.f32 %v1608_v31, %v338_v52  ;;  %v3600_v31 = vld [vmem:[#allocation8 + $0x48] sm:$0xf0] }
 0x100   :  { %2310 = vmatpush.bf16.msrb.mxu1 %v3679_v8  ;;  %v3627_v8 = vor.u32 %v4129_v58, %v3624_v60  ;;  %v3691_v12 = vor.u32 %v4145_v3, %v3688_v4  ;;  %v3584_v58 = vld [vmem:[#allocation8 + $0x28] sm:$0xf0]  ;;  %v4135_v60 = vld [vmem:[#allocation8 + $0xa4] sm:$0xf] }
 0x101   :  { %v1581_v50 = vadd.f32 %v1580_v9, %v1567_v39  ;;  %v3631_v9 = vor.u32 %v4132_v63, %v3630_v61  ;;  %v1623_v16 = vadd.f32 %v1622_v51, %v1609_v5  ;;  %v3656_v51 = vld [vmem:[#allocation8 + $0xb8] sm:$0xf0]  ;;  %v3648_v61 = vld [vmem:[#allocation8 + $0xa8] sm:$0xf0]  ;;  %v3734_v63 = vld [vmem:[#allocation8 + $0x150] sm:$0xf] }
 0x103   :  { %2297 = vmatpush.bf16.msrb.mxu0 %v3607_v15  ;;  %v1595_v1 = vadd.f32 %v1594_v42, %v1581_v50  ;;  %v4143_v15 = vld [vmem:[#allocation8 + $0xe4] sm:$0xf]  ;;  %v4125_v42 = vld [vmem:[#allocation8 + $0x54] sm:$0xf]  ;;  %v1664_v2 = vpop.f32.mrf.mxu3  ;;  %v1637_v41 = vadd.f32 %v1636_v0, %v1623_v16  ;;  %v4160_v50 = vld [vmem:[#allocation8 + $0x164] sm:$0xf0] }
 0x104   :  { %2311 = vmatpush.bf16.msrb.mxu1 %v3671_v17  ;;  %v3683_v24 = vor.u32 %v4143_v15, %v3680_v23  ;;  %v3743_v52 = vor.u32 %v4160_v50, %v3742_v49  ;;  %v4133_v16 = vld [vmem:[#allocation8 + $0x94] sm:$0xf] }
 0x105   :  { %v1596_v47 = vpop.f32.mrf.mxu2  ;;  %v1893_v13 = vmax.f32 %v1595_v1, 0.0  ;;  %v4158_v1 = vld [vmem:[#allocation8 + $0x154] sm:$0xf0] }
 0x106   :  { %v1597_v57 = vadd.f32 %v1596_v47, %v1583_v11  ;;  %v1624_v18 = vpop.f32.mrf.mxu0  ;;  %v1638_v20 = vpop.f32.mrf.mxu1  ;;  %v3592_v47 = vld [vmem:[#allocation8 + $0x38] sm:$0xf0]  ;;  %v4137_v11 = vld [vmem:[#allocation8 + $0xb4] sm:$0xf]  ;;  %v3735_v4 = vor.u32 %v4158_v1, %v3734_v63  ;;  %v3798_v1 = vld [vmem:[#allocation8 + $0x1d0] sm:$0xf] }
 0x107   :  { %2298 = vmatpush.bf16.msrb.mxu0 %v3599_v21  ;;  %v3608_v21 = vld [vmem:[#allocation8 + $0x58] sm:$0xf0]  ;;  %v1625_v28 = vadd.f32 %v1624_v18, %v1611_v37  ;;  %v3595_v54 = vor.u32 %v4121_v44, %v3592_v47  ;;  %v4159_v47 = vld [vmem:[#allocation8 + $0x164] sm:$0xf] }
 0x108   :  { %2312 = vmatpush.bf16.msrb.mxu1 %v3663_v25  ;;  %v1897_v7 = vmax.f32 %v1597_v57, 0.0  ;;  %v4141_v25 = vld [vmem:[#allocation8 + $0xd4] sm:$0xf]  ;;  %v3611_v27 = vor.u32 %v4125_v42, %v3608_v21  ;;  %v3640_v18 = vld [vmem:[#allocation8 + $0x98] sm:$0xf0] }
 0x109   :  { %v3675_v32 = vor.u32 %v4141_v25, %v3672_v26  ;;  %v1639_v45 = vadd.f32 %v1638_v20, %v1625_v28  ;;  %v4115_v42 = vld [vmem:[#allocation8 + $0x4] sm:$0xf]  ;;  %v3568_v21 = vld [vmem:[#allocation8 + $0x8] sm:$0xf0]  ;;  %v4154_v25 = vld [vmem:[#allocation8 + $0x134] sm:$0xf0] }
 0x10a   :  { %v4500_v17 = vpack.c.bf16 %v1897_v7, %v1893_v13  ;;  %v4117_v7 = vld [vmem:[#allocation8 + $0x14] sm:$0xf]  ;;  %v3726_v13 = vld [vmem:[#allocation8 + $0x140] sm:$0xf]  ;;  %v3752_v44 = vld [vmem:[#allocation8 + $0x178] sm:$0xf0] }
 0x10b   :  { %2299 = vmatpush.bf16.msrb.mxu0 %v3591_v33  ;;  %v4139_v33 = vld [vmem:[#allocation8 + $0xc4] sm:$0xf]  ;;  %v1666_v57 = vpop.f32.mrf.mxu3 }
 0x10c   :  { %2313 = vmatpush.bf16.msrb.mxu1 %v3655_v35  ;;  %v4162_v35 = vld [vmem:[#allocation8 + $0x174] sm:$0xf0]  ;;  %v3667_v48 = vor.u32 %v4139_v33, %v3664_v34 }
 0x10d   :  { %v1650_v14 = vpop.f32.mrf.mxu2  ;;  %v3751_v38 = vor.u32 %v4162_v35, %v3750_v22  ;;  %v3702_v22 = vld [vmem:[#allocation8 + $0x110] sm:$0xf]  ;;  %v4150_v35 = vld [vmem:[#allocation8 + $0x114] sm:$0xf0] }
 0x10e   :  { %v1651_v36 = vadd.f32 %v1650_v14, %v1637_v41  ;;  %v4156_v14 = vld [vmem:[#allocation8 + $0x144] sm:$0xf0]  ;;  %v4131_v41 = vld [vmem:[#allocation8 + $0x84] sm:$0xf] }
 0x10f   :  { %2300 = vmatpush.bf16.msrb.mxu0 %v3583_v43  ;;  %v3603_v43 = vor.u32 %v4123_v29, %v3600_v31  ;;  %2323 = vmatpush.bf16.msrb.mxu2 %v3751_v38  ;;  %v3727_v15 = vor.u32 %v4156_v14, %v3726_v13  ;;  %v3571_v29 = vor.u32 %v4115_v42, %v3568_v21  ;;  %v3710_v31 = vld [vmem:[#allocation8 + $0x120] sm:$0xf]  ;;  %v3712_v13 = vld [vmem:[#allocation8 + $0x128] sm:$0xf0] }
 0x110   :  { %2314 = vmatpush.bf16.msrb.mxu1 %v3647_v46  ;;  %v1665_v0 = vadd.f32 %v1664_v2, %v1651_v36  ;;  %v3718_v2 = vld [vmem:[#allocation8 + $0x130] sm:$0xf]  ;;  %v3703_v36 = vor.u32 %v4150_v35, %v3702_v22  ;;  %v3694_v38 = vld [vmem:[#allocation8 + $0x100] sm:$0xf] }
 0x111   :  { %v3719_v28 = vor.u32 %v4154_v25, %v3718_v2  ;;  %v3774_v25 = vld [vmem:[#allocation8 + $0x1a0] sm:$0xf] }
 0x113   :  { %2301 = vmatpush.bf16.msrb.mxu0 %v3575_v53  ;;  %2324 = vmatpush.bf16.msrb.mxu2 %v3743_v52  ;;  %v4157_v52 = vld [vmem:[#allocation8 + $0x154] sm:$0xf] }
 0x114   :  { %2315 = vmatpush.bf16.msrb.mxu1 %v3639_v59  ;;  %v3659_v59 = vor.u32 %v4137_v11, %v3656_v51  ;;  %v3814_v11 = vld [vmem:[#allocation8 + $0x1f0] sm:$0xf]  ;;  %v4178_v51 = vld [vmem:[#allocation8 + $0x1f4] sm:$0xf0] }
 0x115   :  { %v1652_v39 = vpop.f32.mrf.mxu2 }
 0x116   :  { %v1653_v53 = vadd.f32 %v1652_v39, %v1639_v45  ;;  %v4148_v39 = vld [vmem:[#allocation8 + $0x104] sm:$0xf0] }
 0x117   :  { %2302 = vmatpush.bf16.msrb.mxu0 %v3567_v6  ;;  %v3587_v6 = vor.u32 %v4119_v56, %v3584_v58  ;;  %2325 = vmatpush.bf16.msrb.mxu2 %v3735_v4  ;;  %v4153_v4 = vld [vmem:[#allocation8 + $0x134] sm:$0xf] }
 0x118   :  { %2316 = vmatpush.bf16.msrb.mxu1 %v3631_v9  ;;  %v1692_v46 = vpop.f32.mrf.mxu1  ;;  %v1667_v3 = vadd.f32 %v1666_v57, %v1653_v53  ;;  %v3736_v53 = vld [vmem:[#allocation8 + $0x158] sm:$0xf0]  ;;  %v3806_v57 = vld [vmem:[#allocation8 + $0x1e0] sm:$0xf] }
 0x119   :  { %v1678_v40 = vpop.f32.mrf.mxu0 }
 0x11a   :  { %2303 = vmatmul.bf16.vlgmr.msrb.gmra.mxu0 %v4500_v17  ;;  %v1679_v55 = vadd.f32 %v1678_v40, %v1665_v0  ;;  %v3695_v40 = vor.u32 %v4148_v39, %v3694_v38  ;;  %v3815_v0 = vor.u32 %v4178_v51, %v3814_v11  ;;  %v3766_v38 = vld [vmem:[#allocation8 + $0x190] sm:$0xf]  ;;  %v4166_v39 = vld [vmem:[#allocation8 + $0x194] sm:$0xf0]  ;;  %v4177_v51 = vld [vmem:[#allocation8 + $0x1f4] sm:$0xf] }
 0x11b   :  { %2351 = vmatpush.bf16.msra.mxu0 %v3627_v8  ;;  %2326 = vmatpush.bf16.msrb.mxu2 %v3727_v15 }
 0x11c   :  { %2365 = vmatpush.bf16.msra.mxu1 %v3691_v12  ;;  %v1693_v8 = vadd.f32 %v1692_v46, %v1679_v55  ;;  %v3651_v12 = vor.u32 %v4135_v60, %v3648_v61  ;;  %2337 = vmatpush.bf16.msrb.mxu3 %v3815_v0  ;;  %v4155_v55 = vld [vmem:[#allocation8 + $0x144] sm:$0xf]  ;;  %v339_v60 = vperm.slane %v4486_v30, 2 }
 0x11e   :  { %v1894_v37 = vmax.f32 %v1693_v8, 0.0  ;;  %v3790_v8 = vld [vmem:[#allocation8 + $0x1c0] sm:$0xf] }
 0x11f   :  { %2352 = vmatpush.bf16.msra.mxu0 %v3619_v19  ;;  %v3579_v19 = vor.u32 %v4117_v7, %v3576_v62  ;;  %2327 = vmatpush.bf16.msrb.mxu2 %v3719_v28  ;;  %v3720_v7 = vld [vmem:[#allocation8 + $0x138] sm:$0xf0]  ;;  %v3696_v28 = vld [vmem:[#allocation8 + $0x108] sm:$0xf0] }
 0x120   :  { %2366 = vmatpush.bf16.msra.mxu1 %v3683_v24  ;;  %v1694_v10 = vpop.f32.mrf.mxu1  ;;  %v3643_v24 = vor.u32 %v4133_v16, %v3640_v18  ;;  %v1706_v46 = vpop.f32.mrf.mxu2  ;;  %v3723_v62 = vor.u32 %v4153_v4, %v3720_v7  ;;  %v4170_v16 = vld [vmem:[#allocation8 + $0x1b4] sm:$0xf0]  ;;  %v3792_v7 = vld [vmem:[#allocation8 + $0x1c8] sm:$0xf0] }
 0x121   :  { %v1680_v5 = vpop.f32.mrf.mxu0  ;;  %v1720_v50 = vpop.f32.mrf.mxu3 }
 0x122   :  { %v1681_v9 = vadd.f32 %v1680_v5, %v1667_v3  ;;  %v4174_v3 = vld [vmem:[#allocation8 + $0x1d4] sm:$0xf0] }
 0x123   :  { %2353 = vmatpush.bf16.msra.mxu0 %v3611_v27  ;;  %v3632_v27 = vld [vmem:[#allocation8 + $0x88] sm:$0xf0] }
 0x124   :  { %2367 = vmatpush.bf16.msra.mxu1 %v3675_v32  ;;  %v1695_v23 = vadd.f32 %v1694_v10, %v1681_v9  ;;  %v4152_v32 = vld [vmem:[#allocation8 + $0x124] sm:$0xf0]  ;;  %v3635_v34 = vor.u32 %v4131_v41, %v3632_v27  ;;  %v1707_v10 = vadd.f32 %v1706_v46, %v339_v60  ;;  %v4147_v27 = vld [vmem:[#allocation8 + $0x104] sm:$0xf] }
 0x125   :  { %v3711_v33 = vor.u32 %v4152_v32, %v3710_v31  ;;  %v4172_v9 = vld [vmem:[#allocation8 + $0x1c4] sm:$0xf0] }
 0x126   :  { %v1898_v20 = vmax.f32 %v1695_v23, 0.0  ;;  %v3791_v14 = vor.u32 %v4172_v9, %v3790_v8  ;;  %v3782_v23 = vld [vmem:[#allocation8 + $0x1b0] sm:$0xf] }
 0x127   :  { %2354 = vmatpush.bf16.msra.mxu0 %v3603_v43  ;;  %2328 = vmatpush.bf16.msrb.mxu2 %v3711_v33  ;;  %v4161_v43 = vld [vmem:[#allocation8 + $0x174] sm:$0xf] }
 0x128   :  { %2368 = vmatpush.bf16.msra.mxu1 %v3667_v48  ;;  %v1902_v26 = vpack.c.bf16 %v1898_v20, %v1894_v37  ;;  %v3755_v45 = vor.u32 %v4161_v43, %v3752_v44  ;;  %v3744_v48 = vld [vmem:[#allocation8 + $0x168] sm:$0xf0]  ;;  %v1708_v56 = vpop.f32.mrf.mxu2  ;;  %v3704_v37 = vld [vmem:[#allocation8 + $0x118] sm:$0xf0]  ;;  %v1721_v20 = vadd.f32 %v1720_v50, %v1707_v10  ;;  %v3767_v44 = vor.u32 %v4166_v39, %v3766_v38 }
 0x129   :  { %v3747_v49 = vor.u32 %v4159_v47, %v3744_v48  ;;  %v1722_v5 = vpop.f32.mrf.mxu3  ;;  %v1709_v42 = vadd.f32 %v1708_v56, %v339_v60  ;;  %v3758_v48 = vld [vmem:[#allocation8 + $0x180] sm:$0xf]  ;;  %v3808_v56 = vld [vmem:[#allocation8 + $0x1e8] sm:$0xf0] }
 0x12a   :  { %2317 = vmatmul.bf16.vlgmr.msrb.gmra.mxu1 %v1902_v26 }
 0x12b   :  { %2355 = vmatpush.bf16.msra.mxu0 %v3595_v54  ;;  %2329 = vmatpush.bf16.msrb.mxu2 %v3703_v36  ;;  %v4176_v54 = vld [vmem:[#allocation8 + $0x1e4] sm:$0xf0] }
 0x12c   :  { %2369 = vmatpush.bf16.msra.mxu1 %v3659_v59  ;;  %v3807_v58 = vor.u32 %v4176_v54, %v3806_v57  ;;  %v3728_v59 = vld [vmem:[#allocation8 + $0x148] sm:$0xf0] }
 0x12d   :  { %v3731_v61 = vor.u32 %v4155_v55, %v3728_v59  ;;  %v4175_v55 = vld [vmem:[#allocation8 + $0x1e4] sm:$0xf] }
 0x12e   :  { %2338 = vmatpush.bf16.msrb.mxu3 %v3807_v58  ;;  %v3811_v59 = vor.u32 %v4175_v55, %v3808_v56  ;;  %v4193_v55 = vld [vmem:[#allocation10 + $0x70] sm:$0xff]  ;;  %v4180_v56 = vld [vmem:[#allocation10 + $0x8] sm:$0xff] }
 0x12f   :  { %2356 = vmatpush.bf16.msra.mxu0 %v3587_v6  ;;  %2330 = vmatpush.bf16.msrb.mxu2 %v3695_v40  ;;  %v3799_v6 = vor.u32 %v4174_v3, %v3798_v1  ;;  %v3800_v1 = vld [vmem:[#allocation8 + $0x1d8] sm:$0xf0] }
 0x130   :  { %2370 = vmatpush.bf16.msra.mxu1 %v3651_v12  ;;  %v4151_v12 = vld [vmem:[#allocation8 + $0x124] sm:$0xf] }
 0x131   :  { %v3715_v15 = vor.u32 %v4151_v12, %v3712_v13  ;;  %v3784_v12 = vld [vmem:[#allocation8 + $0x1b8] sm:$0xf0]  ;;  %v340_v13 = vperm.slane %v4486_v30, 3 }
 0x132   :  { %2339 = vmatpush.bf16.msrb.mxu3 %v3799_v6  ;;  %v4171_v6 = vld [vmem:[#allocation8 + $0x1c4] sm:$0xf] }
 0x133   :  { %2357 = vmatpush.bf16.msra.mxu0 %v3579_v19  ;;  %2379 = vmatpush.bf16.msra.mxu2 %v3755_v45  ;;  %v4149_v19 = vld [vmem:[#allocation8 + $0x114] sm:$0xf]  ;;  %v3795_v8 = vor.u32 %v4171_v6, %v3792_v7  ;;  %v1969_v6 = vld [vmem:[%s4522_s4] sm:$0x3] }
 0x134   :  { %2371 = vmatpush.bf16.msra.mxu1 %v3643_v24  ;;  %v3783_v24 = vor.u32 %v4170_v16, %v3782_v23  ;;  %v3707_v2 = vor.u32 %v4149_v19, %v3704_v37  ;;  %v3776_v23 = vld [vmem:[#allocation8 + $0x1a8] sm:$0xf0]  ;;  %v4187_v7 = vld [vmem:[#allocation10 + $0x40] sm:$0xff] }
 0x136   :  { %2340 = vmatpush.bf16.msrb.mxu3 %v3791_v14 }
 0x137   :  { %2358 = vmatpush.bf16.msra.mxu0 %v3571_v29  ;;  %2380 = vmatpush.bf16.msra.mxu2 %v3747_v49  ;;  %v1723_v29 = vadd.f32 %v1722_v5, %v1709_v42  ;;  %v4164_v49 = vld [vmem:[#allocation8 + $0x184] sm:$0xf0]  ;;  %v3768_v42 = vld [vmem:[#allocation8 + $0x198] sm:$0xf0] }
 0x138   :  { %2372 = vmatpush.bf16.msra.mxu1 %v3635_v34  ;;  %v1748_v18 = vpop.f32.mrf.mxu1  ;;  %v3699_v34 = vor.u32 %v4147_v27, %v3696_v28  ;;  %v3759_v11 = vor.u32 %v4164_v49, %v3758_v48  ;;  %v3760_v27 = vld [vmem:[#allocation8 + $0x188] sm:$0xf0] }
 0x139   :  { %v1734_v63 = vpop.f32.mrf.mxu0 }
 0x13a   :  { %2359 = vmatmul.bf16.vlgmr.msra.gmra.mxu0 %v4500_v17  ;;  %v3739_v17 = vor.u32 %v4157_v52, %v3736_v53  ;;  %v1735_v31 = vadd.f32 %v1734_v63, %v1721_v20  ;;  %2341 = vmatpush.bf16.msrb.mxu3 %v3783_v24  ;;  %v3816_v52 = vld [vmem:[#allocation8 + $0x1f8] sm:$0xf0]  ;;  %v4173_v63 = vld [vmem:[#allocation8 + $0x1d4] sm:$0xf] }
 0x13b   :  { %2373 = vmatmul.bf16.vlgmr.msra.gmra.mxu1 %v1902_v26  ;;  %v4168_v26 = vld [vmem:[#allocation8 + $0x1a4] sm:$0xf0]  ;;  %v3819_v53 = vor.u32 %v4177_v51, %v3816_v52  ;;  %v3803_v4 = vor.u32 %v4173_v63, %v3800_v1  ;;  %v4165_v20 = vld [vmem:[#allocation8 + $0x194] sm:$0xf]  ;;  %v4186_v51 = vld [vmem:[#allocation10 + $0x38] sm:$0xff] }
 0x13c   :  { %2381 = vmatpush.bf16.msra.mxu2 %v3739_v17  ;;  %v3775_v33 = vor.u32 %v4168_v26, %v3774_v25  ;;  %v1749_v22 = vadd.f32 %v1748_v18, %v1735_v31  ;;  %2545 = vmatpush.bf16.msrb.mxu0 %v4186_v51  ;;  %v4185_v52 = vld [vmem:[#allocation10 + $0x30] sm:$0xff] }
 0x13d   :  { %v4189_v63 = vld [vmem:[#allocation10 + $0x50] sm:$0xff] }
 0x13e   :  { %2342 = vmatpush.bf16.msrb.mxu3 %v3775_v33 }
 0x140   :  { %2382 = vmatpush.bf16.msra.mxu2 %v3731_v61  ;;  %v1762_v21 = vpop.f32.mrf.mxu2  ;;  %v1776_v32 = vpop.f32.mrf.mxu3  ;;  %2546 = vmatpush.bf16.msrb.mxu0 %v4185_v52 }
 0x141   :  { %v1736_v41 = vpop.f32.mrf.mxu0  ;;  %v1750_v36 = vpop.f32.mrf.mxu1  ;;  %v1763_v45 = vadd.f32 %v1762_v21, %v1749_v22  ;;  %v4163_v21 = vld [vmem:[#allocation8 + $0x184] sm:$0xf] }
 0x142   :  { %v1737_v35 = vadd.f32 %v1736_v41, %v1723_v29  ;;  %2343 = vmatpush.bf16.msrb.mxu3 %v3767_v44  ;;  %v3771_v41 = vor.u32 %v4165_v20, %v3768_v42  ;;  %v3763_v30 = vor.u32 %v4163_v21, %v3760_v27 }
 0x143   :  { %v1777_v0 = vadd.f32 %v1776_v32, %v1763_v45 }
 0x144   :  { %2383 = vmatpush.bf16.msra.mxu2 %v3723_v62  ;;  %v1751_v46 = vadd.f32 %v1750_v36, %v1737_v35  ;;  %v4169_v62 = vld [vmem:[#allocation8 + $0x1b4] sm:$0xf] }
 0x145   :  { %v3787_v14 = vor.u32 %v4169_v62, %v3784_v12 }
 0x146   :  { %2344 = vmatpush.bf16.msrb.mxu3 %v3759_v11 }
 0x148   :  { %2384 = vmatpush.bf16.msra.mxu2 %v3715_v15  ;;  %v1764_v40 = vpop.f32.mrf.mxu2  ;;  %v1778_v50 = vpop.f32.mrf.mxu3  ;;  %v4167_v15 = vld [vmem:[#allocation8 + $0x1a4] sm:$0xf] }
 0x149   :  { %v1765_v47 = vadd.f32 %v1764_v40, %v1751_v46  ;;  %v3779_v16 = vor.u32 %v4167_v15, %v3776_v23 }
 0x14a   :  { %2393 = vmatpush.bf16.msra.mxu3 %v3819_v53  ;;  %v4183_v53 = vld [vmem:[#allocation10 + $0x20] sm:$0xff] }
 0x14b   :  { %v1779_v17 = vadd.f32 %v1778_v50, %v1765_v47 }
 0x14c   :  { %2385 = vmatpush.bf16.msra.mxu2 %v3707_v2 }
 0x14e   :  { %2394 = vmatpush.bf16.msra.mxu3 %v3811_v59  ;;  %v4179_v59 = vld [vmem:[#allocation10] sm:$0xff] }
 0x150   :  { %2386 = vmatpush.bf16.msra.mxu2 %v3699_v34 }
 0x152   :  { %2395 = vmatpush.bf16.msra.mxu3 %v3803_v4 }
 0x156   :  { %2396 = vmatpush.bf16.msra.mxu3 %v3795_v8  ;;  %v1971_v8 = vperm.slane %v1969_v6, 0 }
 0x158   :  { %v1804_v5 = vpop.f32.mrf.mxu1 }
 0x159   :  { %v1790_v43 = vpop.f32.mrf.mxu0  ;;  %v1805_v19 = vadd.f32 %v1804_v5, %v340_v13  ;;  %v4188_v5 = vld [vmem:[#allocation10 + $0x48] sm:$0xff] }
 0x15a   :  { %v1791_v57 = vadd.f32 %v1790_v43, %v1777_v0  ;;  %2397 = vmatpush.bf16.msra.mxu3 %v3787_v14  ;;  %v4184_v0 = vld [vmem:[#allocation10 + $0x28] sm:$0xff] }
 0x15b   :  { %2547 = vmatpush.bf16.msrb.mxu0 %v4184_v0 }
 0x15c   :  { %v1895_v60 = vmax.f32 %v1791_v57, 0.0  ;;  %v4194_v57 = vld [vmem:[#allocation10 + $0x78] sm:$0xff] }
 0x15d   :  { %2559 = vmatpush.bf16.msrb.mxu1 %v4194_v57 }
 0x15e   :  { %2398 = vmatpush.bf16.msra.mxu3 %v3779_v16 }
 0x15f   :  { %2548 = vmatpush.bf16.msrb.mxu0 %v4183_v53 }
 0x160   :  { %v1818_v9 = vpop.f32.mrf.mxu2  ;;  %v1832_v10 = vpop.f32.mrf.mxu3 }
 0x161   :  { %v1792_v54 = vpop.f32.mrf.mxu0  ;;  %v1806_v18 = vpop.f32.mrf.mxu1  ;;  %v1819_v24 = vadd.f32 %v1818_v9, %v1805_v19  ;;  %2560 = vmatpush.bf16.msrb.mxu1 %v4193_v55 }
 0x162   :  { %v1793_v58 = vadd.f32 %v1792_v54, %v1779_v17  ;;  %v1807_v2 = vadd.f32 %v1806_v18, %v340_v13  ;;  %2399 = vmatpush.bf16.msra.mxu3 %v3771_v41  ;;  %v4182_v17 = vld [vmem:[#allocation10 + $0x18] sm:$0xff]  ;;  %v4181_v54 = vld [vmem:[#allocation10 + $0x10] sm:$0xff] }
 0x163   :  { %v1833_v29 = vadd.f32 %v1832_v10, %v1819_v24  ;;  %2549 = vmatpush.bf16.msrb.mxu0 %v4182_v17 }
 0x164   :  { %v1899_v61 = vmax.f32 %v1793_v58, 0.0  ;;  %v4192_v58 = vld [vmem:[#allocation10 + $0x68] sm:$0xff] }
 0x165   :  { %2561 = vmatpush.bf16.msrb.mxu1 %v4192_v58 }
 0x166   :  { %v1903_v3 = vpack.c.bf16 %v1899_v61, %v1895_v60  ;;  %2400 = vmatpush.bf16.msra.mxu3 %v3763_v30  ;;  %v4191_v60 = vld [vmem:[#allocation10 + $0x60] sm:$0xff]  ;;  %v4190_v61 = vld [vmem:[#allocation10 + $0x58] sm:$0xff] }
 0x167   :  { %2550 = vmatpush.bf16.msrb.mxu0 %v4181_v54 }
 0x168   :  { %2331 = vmatmul.bf16.vlgmr.msrb.gmra.mxu2 %v1903_v3  ;;  %v1820_v37 = vpop.f32.mrf.mxu2  ;;  %v1834_v25 = vpop.f32.mrf.mxu3 }
 0x169   :  { %v1821_v31 = vadd.f32 %v1820_v37, %v1807_v2  ;;  %2562 = vmatpush.bf16.msrb.mxu1 %v4191_v60 }
 0x16b   :  { %v1835_v34 = vadd.f32 %v1834_v25, %v1821_v31  ;;  %2551 = vmatpush.bf16.msrb.mxu0 %v4180_v56 }
 0x16d   :  { %2563 = vmatpush.bf16.msrb.mxu1 %v4190_v61 }
 0x16f   :  { %2552 = vmatpush.bf16.msrb.mxu0 %v4179_v59 }
 0x171   :  { %2564 = vmatpush.bf16.msrb.mxu1 %v4189_v63 }
 0x175   :  { %2565 = vmatpush.bf16.msrb.mxu1 %v4188_v5 }
 0x178   :  { %2387 = vmatmul.bf16.vlgmr.msra.gmra.mxu2 %v1903_v3  ;;  %v1860_v28 = vpop.f32.mrf.mxu1 }
 0x179   :  { %v1846_v26 = vpop.f32.mrf.mxu0  ;;  %2566 = vmatpush.bf16.msrb.mxu1 %v4187_v7 }
 0x17a   :  { %v1847_v32 = vadd.f32 %v1846_v26, %v1833_v29  ;;  %v1972_v26 = vperm.slane %v1969_v6, 1 }
 0x17c   :  { %v1861_v36 = vadd.f32 %v1860_v28, %v1847_v32 }
 0x180   :  { %v1874_v33 = vpop.f32.mrf.mxu2  ;;  %v1888_v22 = vpop.f32.mrf.mxu3 }
 0x181   :  { %v1848_v35 = vpop.f32.mrf.mxu0  ;;  %v1875_v39 = vadd.f32 %v1874_v33, %v1861_v36  ;;  %v1862_v40 = vpop.f32.mrf.mxu1 }
 0x182   :  { %v1849_v38 = vadd.f32 %v1848_v35, %v1835_v34 }
 0x183   :  { %v1889_v45 = vadd.f32 %v1888_v22, %v1875_v39 }
 0x184   :  { %v1863_v43 = vadd.f32 %v1862_v40, %v1849_v38 }
 0x185   :  { %v1896_v49 = vmax.f32 %v1889_v45, 0.0 }
 0x188   :  { %v1876_v44 = vpop.f32.mrf.mxu2  ;;  %v1890_v47 = vpop.f32.mrf.mxu3 }
 0x189   :  { %v1877_v46 = vadd.f32 %v1876_v44, %v1863_v43 }
 0x18b   :  { %v1891_v48 = vadd.f32 %v1890_v47, %v1877_v46  ;;  %v4209_v46 = vld [vmem:[%s4524_s6] ss:$0 sm:$0xff]  ;;  %s4383_s6 = smov [#allocation11]  }
 0x18c   :  { %s2623_s9 = sshll.u32 %s4383_s6, 4  ;;  %s2624_s9 = int_to_ptr.vmem [resolvable:$true] %s2623_s9 }
 0x18d   :  { %v1900_v50 = vmax.f32 %v1891_v48, 0.0 }
 0x18f   :  { %v1904_v11 = vpack.c.bf16 %v1900_v50, %v1896_v49 }
 0x191   :  { %2345 = vmatmul.bf16.vlgmr.msrb.gmra.mxu3 %v1904_v11 }
 0x197   :  { %v2304_v1 = vpop.f32.mrf.mxu0 }
 0x198   :  { %v2305_v13 = vadd.f32 %v2304_v1, %v1971_v8 }
 0x19f   :  { %v2306_v9 = vpop.f32.mrf.mxu0 }
 0x1a0   :  { %v2307_v14 = vadd.f32 %v2306_v9, %v1971_v8 }
 0x1a1   :  { %2401 = vmatmul.bf16.vlgmr.msra.gmra.mxu3 %v1904_v11 }
 0x1a7   :  { %v2318_v3 = vpop.f32.mrf.mxu1 }
 0x1a8   :  { %v2319_v15 = vadd.f32 %v2318_v3, %v2305_v13 }
 0x1af   :  { %v2320_v10 = vpop.f32.mrf.mxu1 }
 0x1b0   :  { %v2321_v23 = vadd.f32 %v2320_v10, %v2307_v14 }
 0x1b7   :  { %v2360_v18 = vpop.f32.mrf.mxu0 }
 0x1b8   :  { %v2374_v20 = vpop.f32.mrf.mxu1  ;;  %v2361_v28 = vadd.f32 %v2360_v18, %v1972_v26 }
 0x1ba   :  { %v2375_v32 = vadd.f32 %v2374_v20, %v2361_v28 }
 0x1bf   :  { %v2362_v27 = vpop.f32.mrf.mxu0 }
 0x1c0   :  { %v2376_v29 = vpop.f32.mrf.mxu1  ;;  %v2363_v31 = vadd.f32 %v2362_v27, %v1972_v26 }
 0x1c2   :  { %v2377_v34 = vadd.f32 %v2376_v29, %v2363_v31 }
 0x1eb   :  { %v2332_v4 = vpop.f32.mrf.mxu2 }
 0x1ec   :  { %v2333_v16 = vadd.f32 %v2332_v4, %v2319_v15 }
 0x1f3   :  { %v2334_v62 = vpop.f32.mrf.mxu2 }
 0x1f4   :  { %v2335_v19 = vadd.f32 %v2334_v62, %v2321_v23 }
 0x1fb   :  { %v2388_v24 = vpop.f32.mrf.mxu2 }
 0x1fc   :  { %v2389_v22 = vadd.f32 %v2388_v24, %v2375_v32 }
 0x203   :  { %v2390_v33 = vpop.f32.mrf.mxu2 }
 0x204   :  { %v2391_v35 = vadd.f32 %v2390_v33, %v2377_v34 }
 0x214   :  { %v2346_v12 = vpop.f32.mrf.mxu3 }
 0x215   :  { %v2347_v37 = vadd.f32 %v2346_v12, %v2333_v16 }
 0x217   :  { %v2407_v2 = vmax.f32 %v2347_v37, 0.0 }
 0x21c   :  { %v2348_v42 = vpop.f32.mrf.mxu3 }
 0x21d   :  { %v2349_v21 = vadd.f32 %v2348_v42, %v2335_v19 }
 0x21f   :  { %v2409_v25 = vmax.f32 %v2349_v21, 0.0 }
 0x221   :  { %v2411_v41 = vpack.c.bf16 %v2409_v25, %v2407_v2 }
 0x223   :  { %2553 = vmatmul.bf16.vlgmr.msrb.gmra.mxu0 %v2411_v41 }
 0x224   :  { %v2402_v30 = vpop.f32.mrf.mxu3 }
 0x225   :  { %v2403_v36 = vadd.f32 %v2402_v30, %v2389_v22 }
 0x227   :  { %v2408_v40 = vmax.f32 %v2403_v36, 0.0 }
 0x22c   :  { %v2404_v38 = vpop.f32.mrf.mxu3 }
 0x22d   :  { %v2405_v39 = vadd.f32 %v2404_v38, %v2391_v35 }
 0x22f   :  { %v2410_v43 = vmax.f32 %v2405_v39, 0.0 }
 0x231   :  { %v2412_v44 = vpack.c.bf16 %v2410_v43, %v2408_v40 }
 0x233   :  { %2567 = vmatmul.bf16.vlgmr.msrb.gmra.mxu1 %v2412_v44 }
 0x2a0   :  { %v2554_v45 = vpop.f32.mrf.mxu0 }
 0x2a1   :  { %v2555_v47 = vadd.f32 %v4209_v46, %v2554_v45 }
 0x2a8   :  { %v2556_v50 = vpop.f32.mrf.mxu0 }
 0x2a9   :  { %v2557_v11 = vadd.f32 %v4209_v46, %v2556_v50 }
 0x2b0   :  { %v2568_v48 = vpop.f32.mrf.mxu1 }
 0x2b1   :  { %v2569_v49 = vadd.f32 %v2568_v48, %v2555_v47 }
 0x2b3   :  { %2573 = vmax.xlane.f32.xlu0 %v2569_v49 }
 0x2b8   :  { %v2570_v51 = vpop.f32.mrf.mxu1 }
 0x2b9   :  { %v2571_v52 = vadd.f32 %v2570_v51, %v2557_v11 }
 0x2bb   :  { %2575 = vmax.xlane.f32.xlu0 %v2571_v52 }
 0x326   :  { %v2574_v0 = vpop.xlane.xlu0 %2573 }
 0x327   :  { %v2577_v53 = vsub.f32 %v2569_v49, %v2574_v0 }
 0x329   :  { %v2579_v17 = vmul.f32 1.442695, %v2577_v53 }
 0x32b   :  { %4210 = vpow2.f32 %v2579_v17 }
 0x32e   :  { %v2576_v57 = vpop.xlane.xlu0 %2575 }
 0x32f   :  { %v2578_v54 = vsub.f32 %v2571_v52, %v2576_v57 }
 0x331   :  { %v4211_v55 = vpop.eup %4210  ;;  %v2581_v56 = vmul.f32 1.442695, %v2578_v54 }
 0x332   :  { %2583 = vadd.xlane.f32.xlu1 %v4211_v55 }
 0x333   :  { %4212 = vpow2.f32 %v2581_v56 }
 0x339   :  { %v4213_v58 = vpop.eup %4212 }
 0x33a   :  { %2585 = vadd.xlane.f32.xlu1 %v4213_v58 }
 0x3a5   :  { %v2584_v59 = vpop.xlane.xlu1 %2583 }
 0x3a6   :  { %4214 = vrcp.f32 %v2584_v59  ;;  %v2598_v3 = vand.u32 2147483648, %v2584_v59  ;;  %v2596_v5 = vand.u32 2147483647, %v2584_v59  ;;  %vm2592_vm1 = vweird.f32 %v2584_v59 }
 0x3a8   :  { %v2599_v8 = vor.u32 1.1754944e-38, %v2598_v3  ;;  %vm2597_vm3 = vcmp.eq.f32.partialorder %v2596_v5, 8.507059e+37 }
 0x3ac   :  { %v4215_v60 = vpop.eup %4214 }
 0x3ad   :  { %v2588_v61 = vmul.f32 %v4215_v60, %v2584_v59  ;;  %v2586_v63 = vpop.xlane.xlu1 %2585  ;;  %vm2593_vm0 = vweird.f32 %v4215_v60 }
 0x3ae   :  { %4216 = vrcp.f32 %v2586_v63  ;;  %vm2594_vm2 = vmor %vm2592_vm1, %vm2593_vm0  ;;  %v2613_v14 = vand.u32 2147483648, %v2586_v63  ;;  %v2611_v23 = vand.u32 2147483647, %v2586_v63  ;;  %vm2607_vm5 = vweird.f32 %v2586_v63 }
 0x3af   :  { %v2589_v1 = vsub.f32 1.0, %v2588_v61 }
 0x3b0   :  { %v2614_v18 = vor.u32 1.1754944e-38, %v2613_v14  ;;  %vm2612_vm7 = vcmp.eq.f32.partialorder %v2611_v23, 8.507059e+37 }
 0x3b1   :  { %v2590_v4 = vmul.f32 %v4215_v60, %v2589_v1 }
 0x3b3   :  { %v2591_v6 = vadd.f32 %v4215_v60, %v2590_v4 }
 0x3b4   :  { %v4217_v7 = vpop.eup %4216 }
 0x3b5   :  { %v2603_v9 = vmul.f32 %v4217_v7, %v2586_v63  ;;  %v2595_v10 = vsel %vm2594_vm2, %v4215_v60, %v2591_v6  ;;  %vm2608_vm4 = vweird.f32 %v4217_v7 }
 0x3b6   :  { %v2600_v62 = vsel %vm2597_vm3, %v2599_v8, %v2595_v10  ;;  %vm2609_vm6 = vmor %vm2607_vm5, %vm2608_vm4 }
 0x3b7   :  { %v2604_v12 = vsub.f32 1.0, %v2603_v9  ;;  %v2601_v13 = vmul.f32 %v4211_v55, %v2600_v62 }
 0x3b9   :  { %v2605_v15 = vmul.f32 %v4217_v7, %v2604_v12  ;;  %2617 = vst [vmem:[#allocation11] sm:$0xff] %v2601_v13 }
 0x3bb   :  { %v2606_v16 = vadd.f32 %v4217_v7, %v2605_v15 }
 0x3bd   :  { %v2610_v19 = vsel %vm2609_vm6, %v4217_v7, %v2606_v16 }
 0x3be   :  { %v2615_v37 = vsel %vm2612_vm7, %v2614_v18, %v2610_v19 }
 0x3bf   :  { %v2616_v20 = vmul.f32 %v4213_v58, %v2615_v37 }
 0x3c1   :  { %2618 = vst [vmem:[#allocation11 + $0x8] sm:$0xff] %v2616_v20 }
 0x3c2   :  { %2631 = dma.vmem_to_hbm [thread:$0]  %s2624_s9, 256, %s2626_s12, [#allocation4], %s4374_s13, %s4374_s13, %s4375_s14  }
 0x3c3   :  { %4368 = dma.done.wait [#allocation4], 256  }
 0x3c4   :  { %4369 = vsyncadd [#allocation4], 4294967040 }
 0x3c5   :  { %2636 = vsyncpa [#allocation3], 1 }
 0x3c6   :  { %2637 = vsyncpa [#allocation6], 1 }
 0x3c7   :  { %2638 = vsyncpa [#allocation9], 1 }
 0x3c8   :  { %2639 = vsyncpa [#allocation4], 1 }

</bundles_post_ra>
